<compile_context>
chip_gen: v7x
topology: tpu7x:2x2x1
jax: 0.10.0
libtpu: 0.0.40
codegen_flags: <defaults>
</compile_context>

<pallas_src>
import jax
import jax.numpy as jnp
from jax.experimental import pallas as pl
from jax.experimental.pallas import tpu as pltpu

LANE = 128


def _round_up(n, m=LANE):
    return ((n + m - 1) // m) * m


def _pad_axis(a, axis, target):
    if a.shape[axis] == target:
        return a
    widths = [(0, 0)] * a.ndim
    widths[axis] = (0, target - a.shape[axis])
    return jnp.pad(a, widths)


def _fold_bn(gamma, beta, mean, var, eps):
    scale = (gamma / jnp.sqrt(var + eps)).astype(jnp.float32)
    bias = (beta - mean * scale).astype(jnp.float32)
    return scale, bias


# ---------------------------------------------------------------------------
# K1: dense 3x3 conv (stride 1) + folded-BN bias + ReLU.
# ---------------------------------------------------------------------------
def _conv3x3_bn_relu_kernel(x_ref, w_ref, b_ref, o_ref, acc_ref):
    # x_ref : (1, H+2, W+2, Ci)   spatially pre-padded, lane-padded channels
    # w_ref : (3, 3, Ci, Co)      BN scale folded in
    # b_ref : (1, Co)
    # o_ref : (1, H, W, Co)
    # acc_ref: VMEM scratch (H*W, Co) f32
    _, H, W, Co = o_ref.shape
    Ci = x_ref.shape[-1]

    acc_ref[...] = jnp.zeros_like(acc_ref)
    for kh in range(3):                               # 9 taps, K = Ci >= 128 each
        for kw in range(3):
            patch = x_ref[0, kh:kh + H, kw:kw + W, :]               # (H, W, Ci)
            acc_ref[...] += jnp.dot(patch.reshape(H * W, Ci), w_ref[kh, kw],
                                    preferred_element_type=jnp.float32)
    y = jnp.maximum(acc_ref[...] + b_ref[...], 0.0)
    o_ref[0] = y.reshape(H, W, Co).astype(o_ref.dtype)


# ---------------------------------------------------------------------------
# Depthwise 3x3, stride 2, expressed over space-to-depth phases (9 stride-1 taps).
# ---------------------------------------------------------------------------
def _dw3x3_s2(phases, w_ref, Ho, Wo):
    # phases[row_parity][col_parity]: ref (1, Ho+1, Wo+1, C)
    # w_ref: (3, 3, 1, C) per-channel filters (BN scale folded)
    C = w_ref.shape[-1]
    acc = jnp.zeros((Ho, Wo, C), jnp.float32)
    for kh in range(3):
        for kw in range(3):
            p = phases[kh % 2][kw % 2]
            dr, dc = kh // 2, kw // 2
            tap = p[0, dr:dr + Ho, dc:dc + Wo, :]                   # (Ho, Wo, C)
            acc = acc + tap.astype(jnp.float32) * w_ref[kh, kw]     # (1, C) bcast
    return acc


# ---------------------------------------------------------------------------
# K2: whole shortcut branch = dw3x3(s2) + BN  ->  1x1 conv + BN.
# ---------------------------------------------------------------------------
def _shortcut_kernel(ee_ref, eo_ref, oe_ref, oo_ref,
                     wdw_ref, bdw_ref, wpw_ref, bpw_ref, o_ref):
    _, Ho, Wo, Co = o_ref.shape
    Ci = ee_ref.shape[-1]
    phases = ((ee_ref, eo_ref), (oe_ref, oo_ref))
    y = _dw3x3_s2(phases, wdw_ref, Ho, Wo) + bdw_ref[...]            # BN, no ReLU
    z = jnp.dot(y.reshape(Ho * Wo, Ci), wpw_ref[...],
                preferred_element_type=jnp.float32) + bpw_ref[...]   # 1x1 + BN
    o_ref[0] = z.reshape(Ho, Wo, Co).astype(o_ref.dtype)


# ---------------------------------------------------------------------------
# K3: main branch tail = dw3x3(s2)+BN -> dw3x3(s1)+BN+ReLU -> 1x1+BN
#     -> + shortcut -> ReLU (fully fused).
# ---------------------------------------------------------------------------
def _main_tail_kernel(ee_ref, eo_ref, oe_ref, oo_ref,
                      wdw1_ref, bdw1_ref, wdw2_ref, bdw2_ref,
                      wpw_ref, bpw_ref, sc_ref, o_ref, halo_ref):
    _, Ho, Wo, Co = o_ref.shape
    Cm = ee_ref.shape[-1]
    phases = ((ee_ref, eo_ref), (oe_ref, oo_ref))

    # dwconv1 (stride 2) + BN (no activation)
    y2 = _dw3x3_s2(phases, wdw1_ref, Ho, Wo) + bdw1_ref[...]

    # stage y2 into a zero-initialized halo scratch for the stride-1 depthwise
    halo_ref[...] = jnp.zeros_like(halo_ref)
    halo_ref[1:Ho + 1, 1:Wo + 1, :] = y2

    # dwconv2 (stride 1) + BN + ReLU
    acc = jnp.zeros((Ho, Wo, Cm), jnp.float32)
    for kh in range(3):
        for kw in range(3):
            acc = acc + halo_ref[kh:kh + Ho, kw:kw + Wo, :] * wdw2_ref[kh, kw]
    y3 = jnp.maximum(acc + bdw2_ref[...], 0.0)

    # conv2 (1x1) + BN, residual add with shortcut, final ReLU
    z = jnp.dot(y3.reshape(Ho * Wo, Cm), wpw_ref[...],
                preferred_element_type=jnp.float32) + bpw_ref[...]
    z = jnp.maximum(z + sc_ref[0].reshape(Ho * Wo, Co), 0.0)
    o_ref[0] = z.reshape(Ho, Wo, Co).astype(o_ref.dtype)


# ---------------------------------------------------------------------------
# Wrapper: PyTorch-style NCHW / OIHW params in, NCHW out.
# ---------------------------------------------------------------------------
def ge_layer_s2(x_nchw, p, *, exp_ratio=6, eps=1e-5):
    N, Cin, H, W = x_nchw.shape
    assert H % 2 == 0 and W % 2 == 0, "even spatial dims required for stride 2"
    Cmid = Cin * exp_ratio
    Cout = p['conv2_w'].shape[0]
    Ho, Wo = H // 2, W // 2
    He, We = Ho + 1, Wo + 1
    CI, CM, CO = _round_up(Cin), _round_up(Cmid), _round_up(Cout)
    f32 = jnp.float32

    # ---- conv1 (+BN+ReLU); fold the dwconv1 grouped-channel repeat into weights.
    s1, b1 = _fold_bn(p['bn1_g'], p['bn1_b'], p['bn1_m'], p['bn1_v'], eps)
    w1 = jnp.transpose(p['conv1_w'], (2, 3, 1, 0)).astype(f32) * s1[None, None, None, :]
    w1 = jnp.repeat(w1, exp_ratio, axis=3)                         # (3,3,Cin,Cmid)
    b1 = jnp.repeat(b1, exp_ratio)
    w1 = _pad_axis(_pad_axis(w1, 2, CI), 3, CM)
    b1 = _pad_axis(b1, 0, CM).reshape(1, CM)

    # ---- dwconv1 (s2) + BN
    sd1, bd1 = _fold_bn(p['dw1_g'], p['dw1_b'], p['dw1_m'], p['dw1_v'], eps)
    wd1 = jnp.transpose(p['dw1_w'], (2, 3, 1, 0)).astype(f32) * sd1[None, None, None, :]
    wd1 = _pad_axis(wd1, 3, CM)                                    # (3,3,1,CM)
    bd1 = _pad_axis(bd1, 0, CM).reshape(1, CM)

    # ---- dwconv2 (s1) + BN + ReLU
    sd2, bd2 = _fold_bn(p['dw2_g'], p['dw2_b'], p['dw2_m'], p['dw2_v'], eps)
    wd2 = jnp.transpose(p['dw2_w'], (2, 3, 1, 0)).astype(f32) * sd2[None, None, None, :]
    wd2 = _pad_axis(wd2, 3, CM)
    bd2 = _pad_axis(bd2, 0, CM).reshape(1, CM)

    # ---- conv2 (1x1) + BN
    sc2, bc2 = _fold_bn(p['bn2_g'], p['bn2_b'], p['bn2_m'], p['bn2_v'], eps)
    wp = p['conv2_w'][:, :, 0, 0].T.astype(f32) * sc2[None, :]     # (Cmid, Cout)
    wp = _pad_axis(_pad_axis(wp, 0, CM), 1, CO)
    bc2 = _pad_axis(bc2, 0, CO).reshape(1, CO)

    # ---- shortcut: dw3x3(s2)+BN then 1x1+BN
    ss1, bs1 = _fold_bn(p['sc_bn1_g'], p['sc_bn1_b'], p['sc_bn1_m'], p['sc_bn1_v'], eps)
    wsd = jnp.transpose(p['sc_dw_w'], (2, 3, 1, 0)).astype(f32) * ss1[None, None, None, :]
    wsd = _pad_axis(wsd, 3, CI)                                    # (3,3,1,CI)
    bs1 = _pad_axis(bs1, 0, CI).reshape(1, CI)

    ss2, bs2 = _fold_bn(p['sc_bn2_g'], p['sc_bn2_b'], p['sc_bn2_m'], p['sc_bn2_v'], eps)
    wsp = p['sc_pw_w'][:, :, 0, 0].T.astype(f32) * ss2[None, :]    # (Cin, Cout)
    wsp = _pad_axis(_pad_axis(wsp, 0, CI), 1, CO)
    bs2 = _pad_axis(bs2, 0, CO).reshape(1, CO)

    # ---- input: NCHW -> NHWC, lane-pad channels, spatial pad for 3x3.
    x = jnp.transpose(x_nchw, (0, 2, 3, 1)).astype(f32)
    x = _pad_axis(x, 3, CI)                                        # (N, H, W, CI)
    x_sp = jnp.pad(x, ((0, 0), (1, 1), (1, 1), (0, 0)))            # (N, H+2, W+2, CI)

    parallel = pltpu.CompilerParams(dimension_semantics=("parallel",))

    # ---- K1: conv1 + BN + ReLU (output already in repeated mid-channel layout)
    y1 = pl.pallas_call(
        _conv3x3_bn_relu_kernel,
        out_shape=jax.ShapeDtypeStruct((N, H, W, CM), f32),
        grid_spec=pltpu.PrefetchScalarGridSpec(
            num_scalar_prefetch=0,
            grid=(N,),
            in_specs=[
                pl.BlockSpec((1, H + 2, W + 2, CI), lambda n: (n, 0, 0, 0)),
                pl.BlockSpec((3, 3, CI, CM), lambda n: (0, 0, 0, 0)),
                pl.BlockSpec((1, CM), lambda n: (0, 0)),
            ],
            out_specs=pl.BlockSpec((1, H, W, CM), lambda n: (n, 0, 0, 0)),
            scratch_shapes=[pltpu.VMEM((H * W, CM), jnp.float32)],
        ),
        compiler_params=parallel,
    )(x_sp, w1, b1)

    def phases(t):
        # space-to-depth split of the (spatially padded) tensor into stride-2 phases
        tp = jnp.pad(t, ((0, 0), (1, 1), (1, 1), (0, 0)))
        return (tp[:, 0::2, 0::2, :], tp[:, 0::2, 1::2, :],
                tp[:, 1::2, 0::2, :], tp[:, 1::2, 1::2, :])

    # ---- K2: shortcut branch
    xee, xeo, xoe, xoo = phases(x)
    phase_spec_ci = pl.BlockSpec((1, He, We, CI), lambda n: (n, 0, 0, 0))
    shortcut = pl.pallas_call(
        _shortcut_kernel,
        out_shape=jax.ShapeDtypeStruct((N, Ho, Wo, CO), f32),
        grid_spec=pltpu.PrefetchScalarGridSpec(
            num_scalar_prefetch=0,
            grid=(N,),
            in_specs=[phase_spec_ci] * 4 + [
                pl.BlockSpec((3, 3, 1, CI), lambda n: (0, 0, 0, 0)),
                pl.BlockSpec((1, CI), lambda n: (0, 0)),
                pl.BlockSpec((CI, CO), lambda n: (0, 0)),
                pl.BlockSpec((1, CO), lambda n: (0, 0)),
            ],
            out_specs=pl.BlockSpec((1, Ho, Wo, CO), lambda n: (n, 0, 0, 0)),
        ),
        compiler_params=parallel,
    )(xee, xeo, xoe, xoo, wsd, bs1, wsp, bs2)

    # ---- K3: main branch tail + residual + ReLU
    yee, yeo, yoe, yoo = phases(y1)
    phase_spec_cm = pl.BlockSpec((1, He, We, CM), lambda n: (n, 0, 0, 0))
    out_nhwc = pl.pallas_call(
        _main_tail_kernel,
        out_shape=jax.ShapeDtypeStruct((N, Ho, Wo, CO), f32),
        grid_spec=pltpu.PrefetchScalarGridSpec(
            num_scalar_prefetch=0,
            grid=(N,),
            in_specs=[phase_spec_cm] * 4 + [
                pl.BlockSpec((3, 3, 1, CM), lambda n: (0, 0, 0, 0)),
                pl.BlockSpec((1, CM), lambda n: (0, 0)),
                pl.BlockSpec((3, 3, 1, CM), lambda n: (0, 0, 0, 0)),
                pl.BlockSpec((1, CM), lambda n: (0, 0)),
                pl.BlockSpec((CM, CO), lambda n: (0, 0)),
                pl.BlockSpec((1, CO), lambda n: (0, 0)),
                pl.BlockSpec((1, Ho, Wo, CO), lambda n: (n, 0, 0, 0)),
            ],
            out_specs=pl.BlockSpec((1, Ho, Wo, CO), lambda n: (n, 0, 0, 0)),
            scratch_shapes=[pltpu.VMEM((Ho + 2, Wo + 2, CM), jnp.float32)],
        ),
        compiler_params=parallel,
    )(yee, yeo, yoe, yoo, wd1, bd1, wd2, bd2, wp, bc2, shortcut)

    out = out_nhwc[..., :Cout]
    return jnp.transpose(out, (0, 3, 1, 2))                        # back to NCHW


# ---------------------------------------------------------------------------
# Plain-JAX reference (eval-mode BN) for the correctness check.
# ---------------------------------------------------------------------------
def _ref_ge_layer_s2(x, p, *, exp_ratio=6, eps=1e-5):
    def conv(t, w, stride, pad, groups=1):
        return jax.lax.conv_general_dilated(
            t, w, window_strides=(stride, stride),
            padding=((pad, pad), (pad, pad)),
            dimension_numbers=('NCHW', 'OIHW', 'NCHW'),
            feature_group_count=groups)

    def bn(t, g, b, m, v):
        s = g / jnp.sqrt(v + eps)
        return t * s[None, :, None, None] + (b - m * s)[None, :, None, None]

    relu = lambda t: jnp.maximum(t, 0.0)
    cin = x.shape[1]

    feat = relu(bn(conv(x, p['conv1_w'], 1, 1),
                   p['bn1_g'], p['bn1_b'], p['bn1_m'], p['bn1_v']))
    feat = bn(conv(feat, p['dw1_w'], 2, 1, groups=cin),
              p['dw1_g'], p['dw1_b'], p['dw1_m'], p['dw1_v'])
    feat = relu(bn(conv(feat, p['dw2_w'], 1, 1, groups=cin * exp_ratio),
                   p['dw2_g'], p['dw2_b'], p['dw2_m'], p['dw2_v']))
    feat = bn(conv(feat, p['conv2_w'], 1, 0),
              p['bn2_g'], p['bn2_b'], p['bn2_m'], p['bn2_v'])

    sc = bn(conv(x, p['sc_dw_w'], 2, 1, groups=cin),
            p['sc_bn1_g'], p['sc_bn1_b'], p['sc_bn1_m'], p['sc_bn1_v'])
    sc = bn(conv(sc, p['sc_pw_w'], 1, 0),
            p['sc_bn2_g'], p['sc_bn2_b'], p['sc_bn2_m'], p['sc_bn2_v'])
    return relu(feat + sc)


if __name__ == "__main__":
    N, Cin, H, W = 2, 4, 16, 16
    exp_ratio = 6
    Cmid = Cin * exp_ratio            # 24
    Cout = 8

    key = jax.random.PRNGKey(0)
    keys = jax.random.split(key, 7)
    x = jax.random.normal(keys[0], (N, Cin, H, W), jnp.float32)

    def bn_params(c):
        return (jnp.linspace(0.5, 1.5, c, dtype=jnp.float32),    # gamma
                jnp.linspace(-0.2, 0.2, c, dtype=jnp.float32),   # beta
                jnp.linspace(-0.1, 0.1, c, dtype=jnp.float32),   # running mean
                jnp.linspace(0.5, 1.5, c, dtype=jnp.float32))    # running var

    g1, be1, m1, v1 = bn_params(Cin)
    gd1, bed1, md1, vd1 = bn_params(Cmid)
    gd2, bed2, md2, vd2 = bn_params(Cmid)
    g2, be2, m2, v2 = bn_params(Cout)
    gs1, bes1, ms1, vs1 = bn_params(Cin)
    gs2, bes2, ms2, vs2 = bn_params(Cout)

    params = dict(
        conv1_w=jax.random.normal(keys[1], (Cin, Cin, 3, 3), jnp.float32) * 0.1,
        bn1_g=g1, bn1_b=be1, bn1_m=m1, bn1_v=v1,
        dw1_w=jax.random.normal(keys[2], (Cmid, 1, 3, 3), jnp.float32) * 0.2,
        dw1_g=gd1, dw1_b=bed1, dw1_m=md1, dw1_v=vd1,
        dw2_w=jax.random.normal(keys[3], (Cmid, 1, 3, 3), jnp.float32) * 0.2,
        dw2_g=gd2, dw2_b=bed2, dw2_m=md2, dw2_v=vd2,
        conv2_w=jax.random.normal(keys[4], (Cout, Cmid, 1, 1), jnp.float32) * 0.2,
        bn2_g=g2, bn2_b=be2, bn2_m=m2, bn2_v=v2,
        sc_dw_w=jax.random.normal(keys[5], (Cin, 1, 3, 3), jnp.float32) * 0.2,
        sc_bn1_g=gs1, sc_bn1_b=bes1, sc_bn1_m=ms1, sc_bn1_v=vs1,
        sc_pw_w=jax.random.normal(keys[6], (Cout, Cin, 1, 1), jnp.float32) * 0.2,
        sc_bn2_g=gs2, sc_bn2_b=bes2, sc_bn2_m=ms2, sc_bn2_v=vs2,
    )

    out = ge_layer_s2(x, params, exp_ratio=exp_ratio)
    out = jax.block_until_ready(out)

    ref = _ref_ge_layer_s2(x, params, exp_ratio=exp_ratio)

    assert out.shape == (N, Cout, H // 2, W // 2), out.shape
    max_err = float(jnp.max(jnp.abs(out - ref)))
    assert jnp.allclose(out, ref, atol=1e-3, rtol=1e-3), f"mismatch, max err {max_err}"
    print("KERNEL_OK")
</pallas_src>

<mosaic_0001>
module attributes {stable_mosaic.version = 11 : i64} {
  func.func @_conv3x3_bn_relu_kernel(%arg0: i32, %arg1: memref<1x18x18x128xf32, #tpu.memory_space<vmem>>, %arg2: memref<3x3x128x128xf32, #tpu.memory_space<vmem>>, %arg3: memref<1x128xf32, #tpu.memory_space<vmem>>, %arg4: memref<1x16x16x128xf32, #tpu.memory_space<vmem>>, %arg5: memref<256x128xf32, #tpu.memory_space<vmem>>) attributes {dimension_semantics = [#tpu.dimension_semantics<parallel>], iteration_bounds = array<i64: 2>, scalar_prefetch = 0 : i64, scratch_operands = 1 : i64, tpu.core_type = #tpu.core_type<tc>, window_params = [{transform_indices = @transform_0, window_bounds = array<i64: 1, 18, 18, 128>}, {pipeline_mode = #tpu.pipeline_mode<synchronous>, transform_indices = @transform_1, window_bounds = array<i64: 3, 3, 128, 128>}, {pipeline_mode = #tpu.pipeline_mode<synchronous>, transform_indices = @transform_2, window_bounds = array<i64: 1, 128>}, {transform_indices = @transform_3, window_bounds = array<i64: 1, 16, 16, 128>}]} {
    %cst = arith.constant 0.000000e+00 : f32
    %0 = vector.broadcast %cst : f32 to vector<256x128xf32>
    %c0 = arith.constant 0 : index
    %c0_0 = arith.constant 0 : index
    %1 = vector.load %arg5[%c0, %c0_0] : memref<256x128xf32, #tpu.memory_space<vmem>>, vector<256x128xf32>
    tpu.vector_store %arg5[%c0, %c0_0], %0 {strides = array<i32>} : memref<256x128xf32, #tpu.memory_space<vmem>>, vector<256x128xf32>,
    %c0_1 = arith.constant 0 : index
    %c0_2 = arith.constant 0 : index
    %c0_3 = arith.constant 0 : index
    %c0_4 = arith.constant 0 : index
    %2 = vector.load %arg1[%c0_1, %c0_2, %c0_3, %c0_4] : memref<1x18x18x128xf32, #tpu.memory_space<vmem>>, vector<1x16x16x128xf32>
    %3 = vector.shape_cast %2 : vector<1x16x16x128xf32> to vector<16x16x128xf32>
    %c0_5 = arith.constant 0 : index
    %c0_6 = arith.constant 0 : index
    %4 = vector.load %arg5[%c0_5, %c0_6] : memref<256x128xf32, #tpu.memory_space<vmem>>, vector<256x128xf32>
    %5 = vector.shape_cast %3 : vector<16x16x128xf32> to vector<256x128xf32>
    %c0_7 = arith.constant 0 : index
    %c0_8 = arith.constant 0 : index
    %c0_9 = arith.constant 0 : index
    %c0_10 = arith.constant 0 : index
    %6 = vector.load %arg2[%c0_7, %c0_8, %c0_9, %c0_10] : memref<3x3x128x128xf32, #tpu.memory_space<vmem>>, vector<1x1x128x128xf32>
    %7 = vector.shape_cast %6 : vector<1x1x128x128xf32> to vector<128x128xf32>
    %cst_11 = arith.constant dense<0.000000e+00> : vector<256x128xf32>
    %8 = tpu.matmul %5, %7, %cst_11 {dimension_numbers = #tpu.dot_dimension_numbers<[1], [0], [0], [1], [0, 0, 1, 1], [], []>} : vector<256x128xf32>, vector<128x128xf32>, vector<256x128xf32> -> vector<256x128xf32>
    %9 = arith.addf %4, %8 : vector<256x128xf32>
    %c0_12 = arith.constant 0 : index
    %c0_13 = arith.constant 0 : index
    %10 = vector.load %arg5[%c0_12, %c0_13] : memref<256x128xf32, #tpu.memory_space<vmem>>, vector<256x128xf32>
    tpu.vector_store %arg5[%c0_12, %c0_13], %9 {strides = array<i32>} : memref<256x128xf32, #tpu.memory_space<vmem>>, vector<256x128xf32>,
    %c0_14 = arith.constant 0 : index
    %c0_15 = arith.constant 0 : index
    %c1 = arith.constant 1 : index
    %c0_16 = arith.constant 0 : index
    %11 = vector.load %arg1[%c0_14, %c0_15, %c1, %c0_16] : memref<1x18x18x128xf32, #tpu.memory_space<vmem>>, vector<1x16x16x128xf32>
    %12 = vector.shape_cast %11 : vector<1x16x16x128xf32> to vector<16x16x128xf32>
    %c0_17 = arith.constant 0 : index
    %c0_18 = arith.constant 0 : index
    %13 = vector.load %arg5[%c0_17, %c0_18] : memref<256x128xf32, #tpu.memory_space<vmem>>, vector<256x128xf32>
    %14 = vector.shape_cast %12 : vector<16x16x128xf32> to vector<256x128xf32>
    %c0_19 = arith.constant 0 : index
    %c1_20 = arith.constant 1 : index
    %c0_21 = arith.constant 0 : index
    %c0_22 = arith.constant 0 : index
    %15 = vector.load %arg2[%c0_19, %c1_20, %c0_21, %c0_22] : memref<3x3x128x128xf32, #tpu.memory_space<vmem>>, vector<1x1x128x128xf32>
    %16 = vector.shape_cast %15 : vector<1x1x128x128xf32> to vector<128x128xf32>
    %cst_23 = arith.constant dense<0.000000e+00> : vector<256x128xf32>
    %17 = tpu.matmul %14, %16, %cst_23 {dimension_numbers = #tpu.dot_dimension_numbers<[1], [0], [0], [1], [0, 0, 1, 1], [], []>} : vector<256x128xf32>, vector<128x128xf32>, vector<256x128xf32> -> vector<256x128xf32>
    %18 = arith.addf %13, %17 : vector<256x128xf32>
    %c0_24 = arith.constant 0 : index
    %c0_25 = arith.constant 0 : index
    %19 = vector.load %arg5[%c0_24, %c0_25] : memref<256x128xf32, #tpu.memory_space<vmem>>, vector<256x128xf32>
    tpu.vector_store %arg5[%c0_24, %c0_25], %18 {strides = array<i32>} : memref<256x128xf32, #tpu.memory_space<vmem>>, vector<256x128xf32>,
    %c0_26 = arith.constant 0 : index
    %c0_27 = arith.constant 0 : index
    %c2 = arith.constant 2 : index
    %c0_28 = arith.constant 0 : index
    %20 = vector.load %arg1[%c0_26, %c0_27, %c2, %c0_28] : memref<1x18x18x128xf32, #tpu.memory_space<vmem>>, vector<1x16x16x128xf32>
    %21 = vector.shape_cast %20 : vector<1x16x16x128xf32> to vector<16x16x128xf32>
    %c0_29 = arith.constant 0 : index
    %c0_30 = arith.constant 0 : index
    %22 = vector.load %arg5[%c0_29, %c0_30] : memref<256x128xf32, #tpu.memory_space<vmem>>, vector<256x128xf32>
    %23 = vector.shape_cast %21 : vector<16x16x128xf32> to vector<256x128xf32>
    %c0_31 = arith.constant 0 : index
    %c2_32 = arith.constant 2 : index
    %c0_33 = arith.constant 0 : index
    %c0_34 = arith.constant 0 : index
    %24 = vector.load %arg2[%c0_31, %c2_32, %c0_33, %c0_34] : memref<3x3x128x128xf32, #tpu.memory_space<vmem>>, vector<1x1x128x128xf32>
    %25 = vector.shape_cast %24 : vector<1x1x128x128xf32> to vector<128x128xf32>
    %cst_35 = arith.constant dense<0.000000e+00> : vector<256x128xf32>
    %26 = tpu.matmul %23, %25, %cst_35 {dimension_numbers = #tpu.dot_dimension_numbers<[1], [0], [0], [1], [0, 0, 1, 1], [], []>} : vector<256x128xf32>, vector<128x128xf32>, vector<256x128xf32> -> vector<256x128xf32>
    %27 = arith.addf %22, %26 : vector<256x128xf32>
    %c0_36 = arith.constant 0 : index
    %c0_37 = arith.constant 0 : index
    %28 = vector.load %arg5[%c0_36, %c0_37] : memref<256x128xf32, #tpu.memory_space<vmem>>, vector<256x128xf32>
    tpu.vector_store %arg5[%c0_36, %c0_37], %27 {strides = array<i32>} : memref<256x128xf32, #tpu.memory_space<vmem>>, vector<256x128xf32>,
    %c0_38 = arith.constant 0 : index
    %c1_39 = arith.constant 1 : index
    %c0_40 = arith.constant 0 : index
    %c0_41 = arith.constant 0 : index
    %29 = vector.load %arg1[%c0_38, %c1_39, %c0_40, %c0_41] : memref<1x18x18x128xf32, #tpu.memory_space<vmem>>, vector<1x16x16x128xf32>
    %30 = vector.shape_cast %29 : vector<1x16x16x128xf32> to vector<16x16x128xf32>
    %c0_42 = arith.constant 0 : index
    %c0_43 = arith.constant 0 : index
    %31 = vector.load %arg5[%c0_42, %c0_43] : memref<256x128xf32, #tpu.memory_space<vmem>>, vector<256x128xf32>
    %32 = vector.shape_cast %30 : vector<16x16x128xf32> to vector<256x128xf32>
    %c1_44 = arith.constant 1 : index
    %c0_45 = arith.constant 0 : index
    %c0_46 = arith.constant 0 : index
    %c0_47 = arith.constant 0 : index
    %33 = vector.load %arg2[%c1_44, %c0_45, %c0_46, %c0_47] : memref<3x3x128x128xf32, #tpu.memory_space<vmem>>, vector<1x1x128x128xf32>
    %34 = vector.shape_cast %33 : vector<1x1x128x128xf32> to vector<128x128xf32>
    %cst_48 = arith.constant dense<0.000000e+00> : vector<256x128xf32>
    %35 = tpu.matmul %32, %34, %cst_48 {dimension_numbers = #tpu.dot_dimension_numbers<[1], [0], [0], [1], [0, 0, 1, 1], [], []>} : vector<256x128xf32>, vector<128x128xf32>, vector<256x128xf32> -> vector<256x128xf32>
    %36 = arith.addf %31, %35 : vector<256x128xf32>
    %c0_49 = arith.constant 0 : index
    %c0_50 = arith.constant 0 : index
    %37 = vector.load %arg5[%c0_49, %c0_50] : memref<256x128xf32, #tpu.memory_space<vmem>>, vector<256x128xf32>
    tpu.vector_store %arg5[%c0_49, %c0_50], %36 {strides = array<i32>} : memref<256x128xf32, #tpu.memory_space<vmem>>, vector<256x128xf32>,
    %c0_51 = arith.constant 0 : index
    %c1_52 = arith.constant 1 : index
    %c1_53 = arith.constant 1 : index
    %c0_54 = arith.constant 0 : index
    %38 = vector.load %arg1[%c0_51, %c1_52, %c1_53, %c0_54] : memref<1x18x18x128xf32, #tpu.memory_space<vmem>>, vector<1x16x16x128xf32>
    %39 = vector.shape_cast %38 : vector<1x16x16x128xf32> to vector<16x16x128xf32>
    %c0_55 = arith.constant 0 : index
    %c0_56 = arith.constant 0 : index
    %40 = vector.load %arg5[%c0_55, %c0_56] : memref<256x128xf32, #tpu.memory_space<vmem>>, vector<256x128xf32>
    %41 = vector.shape_cast %39 : vector<16x16x128xf32> to vector<256x128xf32>
    %c1_57 = arith.constant 1 : index
    %c1_58 = arith.constant 1 : index
    %c0_59 = arith.constant 0 : index
    %c0_60 = arith.constant 0 : index
    %42 = vector.load %arg2[%c1_57, %c1_58, %c0_59, %c0_60] : memref<3x3x128x128xf32, #tpu.memory_space<vmem>>, vector<1x1x128x128xf32>
    %43 = vector.shape_cast %42 : vector<1x1x128x128xf32> to vector<128x128xf32>
    %cst_61 = arith.constant dense<0.000000e+00> : vector<256x128xf32>
    %44 = tpu.matmul %41, %43, %cst_61 {dimension_numbers = #tpu.dot_dimension_numbers<[1], [0], [0], [1], [0, 0, 1, 1], [], []>} : vector<256x128xf32>, vector<128x128xf32>, vector<256x128xf32> -> vector<256x128xf32>
    %45 = arith.addf %40, %44 : vector<256x128xf32>
    %c0_62 = arith.constant 0 : index
    %c0_63 = arith.constant 0 : index
    %46 = vector.load %arg5[%c0_62, %c0_63] : memref<256x128xf32, #tpu.memory_space<vmem>>, vector<256x128xf32>
    tpu.vector_store %arg5[%c0_62, %c0_63], %45 {strides = array<i32>} : memref<256x128xf32, #tpu.memory_space<vmem>>, vector<256x128xf32>,
    %c0_64 = arith.constant 0 : index
    %c1_65 = arith.constant 1 : index
    %c2_66 = arith.constant 2 : index
    %c0_67 = arith.constant 0 : index
    %47 = vector.load %arg1[%c0_64, %c1_65, %c2_66, %c0_67] : memref<1x18x18x128xf32, #tpu.memory_space<vmem>>, vector<1x16x16x128xf32>
    %48 = vector.shape_cast %47 : vector<1x16x16x128xf32> to vector<16x16x128xf32>
    %c0_68 = arith.constant 0 : index
    %c0_69 = arith.constant 0 : index
    %49 = vector.load %arg5[%c0_68, %c0_69] : memref<256x128xf32, #tpu.memory_space<vmem>>, vector<256x128xf32>
    %50 = vector.shape_cast %48 : vector<16x16x128xf32> to vector<256x128xf32>
    %c1_70 = arith.constant 1 : index
    %c2_71 = arith.constant 2 : index
    %c0_72 = arith.constant 0 : index
    %c0_73 = arith.constant 0 : index
    %51 = vector.load %arg2[%c1_70, %c2_71, %c0_72, %c0_73] : memref<3x3x128x128xf32, #tpu.memory_space<vmem>>, vector<1x1x128x128xf32>
    %52 = vector.shape_cast %51 : vector<1x1x128x128xf32> to vector<128x128xf32>
    %cst_74 = arith.constant dense<0.000000e+00> : vector<256x128xf32>
    %53 = tpu.matmul %50, %52, %cst_74 {dimension_numbers = #tpu.dot_dimension_numbers<[1], [0], [0], [1], [0, 0, 1, 1], [], []>} : vector<256x128xf32>, vector<128x128xf32>, vector<256x128xf32> -> vector<256x128xf32>
    %54 = arith.addf %49, %53 : vector<256x128xf32>
    %c0_75 = arith.constant 0 : index
    %c0_76 = arith.constant 0 : index
    %55 = vector.load %arg5[%c0_75, %c0_76] : memref<256x128xf32, #tpu.memory_space<vmem>>, vector<256x128xf32>
    tpu.vector_store %arg5[%c0_75, %c0_76], %54 {strides = array<i32>} : memref<256x128xf32, #tpu.memory_space<vmem>>, vector<256x128xf32>,
    %c0_77 = arith.constant 0 : index
    %c2_78 = arith.constant 2 : index
    %c0_79 = arith.constant 0 : index
    %c0_80 = arith.constant 0 : index
    %56 = vector.load %arg1[%c0_77, %c2_78, %c0_79, %c0_80] : memref<1x18x18x128xf32, #tpu.memory_space<vmem>>, vector<1x16x16x128xf32>
    %57 = vector.shape_cast %56 : vector<1x16x16x128xf32> to vector<16x16x128xf32>
    %c0_81 = arith.constant 0 : index
    %c0_82 = arith.constant 0 : index
    %58 = vector.load %arg5[%c0_81, %c0_82] : memref<256x128xf32, #tpu.memory_space<vmem>>, vector<256x128xf32>
    %59 = vector.shape_cast %57 : vector<16x16x128xf32> to vector<256x128xf32>
    %c2_83 = arith.constant 2 : index
    %c0_84 = arith.constant 0 : index
    %c0_85 = arith.constant 0 : index
    %c0_86 = arith.constant 0 : index
    %60 = vector.load %arg2[%c2_83, %c0_84, %c0_85, %c0_86] : memref<3x3x128x128xf32, #tpu.memory_space<vmem>>, vector<1x1x128x128xf32>
    %61 = vector.shape_cast %60 : vector<1x1x128x128xf32> to vector<128x128xf32>
    %cst_87 = arith.constant dense<0.000000e+00> : vector<256x128xf32>
    %62 = tpu.matmul %59, %61, %cst_87 {dimension_numbers = #tpu.dot_dimension_numbers<[1], [0], [0], [1], [0, 0, 1, 1], [], []>} : vector<256x128xf32>, vector<128x128xf32>, vector<256x128xf32> -> vector<256x128xf32>
    %63 = arith.addf %58, %62 : vector<256x128xf32>
    %c0_88 = arith.constant 0 : index
    %c0_89 = arith.constant 0 : index
    %64 = vector.load %arg5[%c0_88, %c0_89] : memref<256x128xf32, #tpu.memory_space<vmem>>, vector<256x128xf32>
    tpu.vector_store %arg5[%c0_88, %c0_89], %63 {strides = array<i32>} : memref<256x128xf32, #tpu.memory_space<vmem>>, vector<256x128xf32>,
    %c0_90 = arith.constant 0 : index
    %c2_91 = arith.constant 2 : index
    %c1_92 = arith.constant 1 : index
    %c0_93 = arith.constant 0 : index
    %65 = vector.load %arg1[%c0_90, %c2_91, %c1_92, %c0_93] : memref<1x18x18x128xf32, #tpu.memory_space<vmem>>, vector<1x16x16x128xf32>
    %66 = vector.shape_cast %65 : vector<1x16x16x128xf32> to vector<16x16x128xf32>
    %c0_94 = arith.constant 0 : index
    %c0_95 = arith.constant 0 : index
    %67 = vector.load %arg5[%c0_94, %c0_95] : memref<256x128xf32, #tpu.memory_space<vmem>>, vector<256x128xf32>
    %68 = vector.shape_cast %66 : vector<16x16x128xf32> to vector<256x128xf32>
    %c2_96 = arith.constant 2 : index
    %c1_97 = arith.constant 1 : index
    %c0_98 = arith.constant 0 : index
    %c0_99 = arith.constant 0 : index
    %69 = vector.load %arg2[%c2_96, %c1_97, %c0_98, %c0_99] : memref<3x3x128x128xf32, #tpu.memory_space<vmem>>, vector<1x1x128x128xf32>
    %70 = vector.shape_cast %69 : vector<1x1x128x128xf32> to vector<128x128xf32>
    %cst_100 = arith.constant dense<0.000000e+00> : vector<256x128xf32>
    %71 = tpu.matmul %68, %70, %cst_100 {dimension_numbers = #tpu.dot_dimension_numbers<[1], [0], [0], [1], [0, 0, 1, 1], [], []>} : vector<256x128xf32>, vector<128x128xf32>, vector<256x128xf32> -> vector<256x128xf32>
    %72 = arith.addf %67, %71 : vector<256x128xf32>
    %c0_101 = arith.constant 0 : index
    %c0_102 = arith.constant 0 : index
    %73 = vector.load %arg5[%c0_101, %c0_102] : memref<256x128xf32, #tpu.memory_space<vmem>>, vector<256x128xf32>
    tpu.vector_store %arg5[%c0_101, %c0_102], %72 {strides = array<i32>} : memref<256x128xf32, #tpu.memory_space<vmem>>, vector<256x128xf32>,
    %c0_103 = arith.constant 0 : index
    %c2_104 = arith.constant 2 : index
    %c2_105 = arith.constant 2 : index
    %c0_106 = arith.constant 0 : index
    %74 = vector.load %arg1[%c0_103, %c2_104, %c2_105, %c0_106] : memref<1x18x18x128xf32, #tpu.memory_space<vmem>>, vector<1x16x16x128xf32>
    %75 = vector.shape_cast %74 : vector<1x16x16x128xf32> to vector<16x16x128xf32>
    %c0_107 = arith.constant 0 : index
    %c0_108 = arith.constant 0 : index
    %76 = vector.load %arg5[%c0_107, %c0_108] : memref<256x128xf32, #tpu.memory_space<vmem>>, vector<256x128xf32>
    %77 = vector.shape_cast %75 : vector<16x16x128xf32> to vector<256x128xf32>
    %c2_109 = arith.constant 2 : index
    %c2_110 = arith.constant 2 : index
    %c0_111 = arith.constant 0 : index
    %c0_112 = arith.constant 0 : index
    %78 = vector.load %arg2[%c2_109, %c2_110, %c0_111, %c0_112] : memref<3x3x128x128xf32, #tpu.memory_space<vmem>>, vector<1x1x128x128xf32>
    %79 = vector.shape_cast %78 : vector<1x1x128x128xf32> to vector<128x128xf32>
    %cst_113 = arith.constant dense<0.000000e+00> : vector<256x128xf32>
    %80 = tpu.matmul %77, %79, %cst_113 {dimension_numbers = #tpu.dot_dimension_numbers<[1], [0], [0], [1], [0, 0, 1, 1], [], []>} : vector<256x128xf32>, vector<128x128xf32>, vector<256x128xf32> -> vector<256x128xf32>
    %81 = arith.addf %76, %80 : vector<256x128xf32>
    %c0_114 = arith.constant 0 : index
    %c0_115 = arith.constant 0 : index
    %82 = vector.load %arg5[%c0_114, %c0_115] : memref<256x128xf32, #tpu.memory_space<vmem>>, vector<256x128xf32>
    tpu.vector_store %arg5[%c0_114, %c0_115], %81 {strides = array<i32>} : memref<256x128xf32, #tpu.memory_space<vmem>>, vector<256x128xf32>,
    %c0_116 = arith.constant 0 : index
    %c0_117 = arith.constant 0 : index
    %83 = vector.load %arg5[%c0_116, %c0_117] : memref<256x128xf32, #tpu.memory_space<vmem>>, vector<256x128xf32>
    %c0_118 = arith.constant 0 : index
    %c0_119 = arith.constant 0 : index
    %84 = vector.load %arg3[%c0_118, %c0_119] : memref<1x128xf32, #tpu.memory_space<vmem>>, vector<1x128xf32>
    %85 = vector.broadcast %84 : vector<1x128xf32> to vector<256x128xf32>
    %86 = arith.addf %83, %85 : vector<256x128xf32>
    %cst_120 = arith.constant 0.000000e+00 : f32
    %87 = vector.broadcast %cst_120 : f32 to vector<256x128xf32>
    %88 = arith.maximumf %86, %87 : vector<256x128xf32>
    %89 = vector.shape_cast %88 : vector<256x128xf32> to vector<16x16x128xf32>
    %c0_121 = arith.constant 0 : index
    %c0_122 = arith.constant 0 : index
    %c0_123 = arith.constant 0 : index
    %c0_124 = arith.constant 0 : index
    %90 = vector.load %arg4[%c0_121, %c0_122, %c0_123, %c0_124] : memref<1x16x16x128xf32, #tpu.memory_space<vmem>>, vector<1x16x16x128xf32>
    %91 = vector.shape_cast %90 : vector<1x16x16x128xf32> to vector<16x16x128xf32>
    %92 = vector.shape_cast %89 : vector<16x16x128xf32> to vector<1x16x16x128xf32>
    tpu.vector_store %arg4[%c0_121, %c0_122, %c0_123, %c0_124], %92 {strides = array<i32>} : memref<1x16x16x128xf32, #tpu.memory_space<vmem>>, vector<1x16x16x128xf32>,
    return
  }
  func.func @transform_0(%arg0: i32) -> (i32, i32, i32, i32) {
    %c0_i32 = arith.constant 0 : i32
    %c0_i32_0 = arith.constant 0 : i32
    %c0_i32_1 = arith.constant 0 : i32
    %c0_i32_2 = arith.constant 0 : i32
    return %arg0, %c0_i32, %c0_i32_0, %c0_i32_1 : i32, i32, i32, i32
  }
  func.func @transform_1(%arg0: i32) -> (i32, i32, i32, i32) {
    %c0_i32 = arith.constant 0 : i32
    %c0_i32_0 = arith.constant 0 : i32
    %c0_i32_1 = arith.constant 0 : i32
    %c0_i32_2 = arith.constant 0 : i32
    %c0_i32_3 = arith.constant 0 : i32
    return %c0_i32, %c0_i32_0, %c0_i32_1, %c0_i32_2 : i32, i32, i32, i32
  }
  func.func @transform_2(%arg0: i32) -> (i32, i32) {
    %c0_i32 = arith.constant 0 : i32
    %c0_i32_0 = arith.constant 0 : i32
    %c0_i32_1 = arith.constant 0 : i32
    return %c0_i32, %c0_i32_0 : i32, i32
  }
  func.func @transform_3(%arg0: i32) -> (i32, i32, i32, i32) {
    %c0_i32 = arith.constant 0 : i32
    %c0_i32_0 = arith.constant 0 : i32
    %c0_i32_1 = arith.constant 0 : i32
    %c0_i32_2 = arith.constant 0 : i32
    return %arg0, %c0_i32, %c0_i32_0, %c0_i32_1 : i32, i32, i32, i32
  }
}

</mosaic_0001>

<bundles_post_ra>
// kernel: tpu_custom_call.1
= control target key start
LH: loop header
LB: loop body
LE: loop exit
PB: predicated region body
PF: predicated region fallthrough
CT: control target
= control target key end

     0   :  { %8 = vsyncpa [#allocation4], 0  ;;  %s7170_s0 = inlined_call_operand.vmem [shape: f32[2,18,18,128], index: 0, kind: input, shape index: {}]   ;;  %s7171_s1 = inlined_call_operand.vmem [shape: f32[3,3,128,128], index: 1, kind: input, shape index: {}]   ;;  %s7172_s2 = inlined_call_operand.vmem [shape: f32[1,128], index: 2, kind: input, shape index: {}]   ;;  %s7173_s3 = inlined_call_operand.hbm [shape: f32[2,16,16,128], index: 3, kind: output, shape index: {}]  }
   0x1   :  { %10 = vsyncpa [#allocation4 + $0x1], 0  ;;  %s5917_s12 = smov 0   ;;  %s5919_s13 = smov 0  }
   0x2   :  { %s5921_s14 = smov 0   ;;  %s5923_s15 = smov 0  }
   0x3 LB: > { %s5938_s16 = sadd.s32 4294967295, %s5892_s15   ;;  %s3743_s17 = sadd.s32 4294967294, %s5892_s15   ;;  %s5892_s15 = sphi %s5923_s15, %s7238_s15   ;;  %s5888_s14 = sphi %s5921_s14, %s7237_s14   ;;  %s5884_s13 = sphi %s5919_s13, %s7236_s13   ;;  %s5880_s12 = sphi %s5917_s12, %s7235_s12  }
   0x4   : > { %s5942_s18 = sadd.s32 1, %s5892_s15   ;;  %s91_s19 = sadd.s32 1, %s5888_s14 }
   0x5   : > { %s88_s20 = ssub.s32 %s5892_s15, %s5942_s18  ;;  %p101_p0 = scmp.ne.s32.totalorder %s5888_s14, %s5884_s13 }
   0x6   : > { %p89_p1 = scmp.eq.s32.totalorder %s88_s20, 0  ;;  %p102_p2 = scmp.eq.s32.totalorder %s5938_s16, 1 }
   0x7   : > { %p107_p3 = scmp.ne.s32.totalorder %s5884_s13, %s5880_s12  ;;  %p108_p4 = scmp.eq.s32.totalorder %s3743_s17, 1 }
   0x8   : > { %s5953_s21 = scalar_select %p89_p1, %s5888_s14, %s91_s19  }
   0x9   : > { %p5955_p5 = por %p102_p2, %p101_p0  ;;  %p5959_p6 = por %p108_p4, %p107_p3 }
   0xa   : > { %p3746_p7 = scmp.ge.s32.totalorder %s5892_s15, 1  ;;  %p140_p8 = scmp.lt.s32.totalorder %s5892_s15, 3 }
   0xc   : > { %p141_p9 = pnand %p3746_p7, %p140_p8 }
   0xe   : > { %144 = sbr.rel (%p141_p9) target bundleno = 575 (0x23f), region = 32 }
  0x15   : > { %v265_v0 = vld [vmem:[%s7171_s1] sm:$0xff]  ;;  %v266_v1 = vld [vmem:[%s7171_s1 + $0x8] sm:$0xff]  ;;  %p164_p10 = scmp.lt.s32.totalorder %s5938_s16, 1  ;;  %v267_v5 = vld [vmem:[%s7171_s1 + $0x10] sm:$0xff]  ;;  %s4075_s30 = sshll.u32 %s5938_s16, 12 }
  0x16   : > { %v3861_v2 = vld [vmem:[%s7171_s1 + $0x200] sm:$0xff]  ;;  %v5228_v3 = vpack.c.bf16 %v266_v1, %v265_v0  ;;  %v3862_v4 = vld [vmem:[%s7171_s1 + $0x208] sm:$0xff]  ;;  %v268_v6 = vld [vmem:[%s7171_s1 + $0x18] sm:$0xff]  ;;  %s7121_s7 = scalar_lea.hbm %s7173_s3, %s4075_s30  ;;  %s5894_s9 = smov [#allocation3]  }
  0x17   : > { %v5984_v7 = vpack.c.bf16 %v3862_v4, %v3861_v2  ;;  %v5232_v8 = vpack.c.bf16 %v268_v6, %v267_v5  ;;  %v3863_v9 = vld [vmem:[%s7171_s1 + $0x210] sm:$0xff]  ;;  %v3864_v10 = vld [vmem:[%s7171_s1 + $0x218] sm:$0xff]  ;;  %v269_v11 = vld [vmem:[%s7171_s1 + $0x20] sm:$0xff]  ;;  %s165_s24 = scalar_select %p164_p10, %s5938_s16, 1 }
  0x18   : > { %5229 = vmatprep.subr.bf16.mxu1 %v5228_v3  ;;  %v5996_v12 = vpack.c.bf16 %v3864_v10, %v3863_v9  ;;  %v270_v13 = vld [vmem:[%s7171_s1 + $0x28] sm:$0xff]  ;;  %v3865_v14 = vld [vmem:[%s7171_s1 + $0x220] sm:$0xff]  ;;  %v271_v18 = vld [vmem:[%s7171_s1 + $0x30] sm:$0xff]  ;;  %s5834_s10 = sshll.u32 %s5894_s9, 4  ;;  %s5835_s10 = int_to_ptr.vmem [resolvable:$false] %s5834_s10 }
  0x19   : > { %7201 = vst [vmem:[#allocation6_spill] sm:$0xff] %v5984_v7  ;;  %v3866_v15 = vld [vmem:[%s7171_s1 + $0x228] sm:$0xff]  ;;  %5357 = vmatprep.subr.bf16.mxu0 %v5984_v7  ;;  %5231 = vmatpush3.bf16.msra.mxu1 %v5228_v3  ;;  %s5788_s4 = smul.u32 432, %s165_s24  ;;  %v5236_v16 = vpack.c.bf16 %v270_v13, %v269_v11  ;;  %v272_v19 = vld [vmem:[%s7171_s1 + $0x38] sm:$0xff]  ;;  %v3867_v20 = vld [vmem:[%s7171_s1 + $0x230] sm:$0xff]  ;;  %s5836_s11 = scalar_lea.vmem %s5835_s10, 8192 }
  0x1a   : > { %7202 = vst [vmem:[#allocation7_spill] sm:$0xff] %v5996_v12  ;;  %5359 = vmatpush3.bf16.msra.mxu0 %v5984_v7  ;;  %5233 = vmatprep.subr.bf16.mxu1 %v5232_v8  ;;  %v6010_v17 = vpack.c.bf16 %v3866_v15, %v3865_v14  ;;  %v3868_v21 = vld [vmem:[%s7171_s1 + $0x238] sm:$0xff]  ;;  %v5240_v22 = vpack.c.bf16 %v272_v19, %v271_v18  ;;  %v273_v24 = vld [vmem:[%s7171_s1 + $0x40] sm:$0xff]  ;;  %v274_v25 = vld [vmem:[%s7171_s1 + $0x48] sm:$0xff] }
  0x1b   : > { %5361 = vmatprep.subr.bf16.mxu0 %v5996_v12  ;;  %s6027_s24 = scalar_lea.vmem %s7170_s0, %s5788_s4  ;;  %v6031_v23 = vpack.c.bf16 %v3868_v21, %v3867_v20  ;;  %v3869_v27 = vld [vmem:[%s7171_s1 + $0x240] sm:$0xff]  ;;  %v3870_v28 = vld [vmem:[%s7171_s1 + $0x248] sm:$0xff]  ;;  %v5244_v30 = vpack.c.bf16 %v274_v25, %v273_v24  ;;  %v275_v32 = vld [vmem:[%s7171_s1 + $0x50] sm:$0xff] }
  0x1c   : > { %7203 = vst [vmem:[#allocation8_spill] sm:$0xff] %v6010_v17  ;;  %v201_v26 = vld [vmem:[%s6027_s24] sm:$0xff]  ;;  %v6052_v31 = vpack.c.bf16 %v3870_v28, %v3869_v27  ;;  %v276_v33 = vld [vmem:[%s7171_s1 + $0x58] sm:$0xff]  ;;  %v3871_v34 = vld [vmem:[%s7171_s1 + $0x250] sm:$0xff] }
  0x1d   : > { %5235 = vmatpush3.bf16.msra.mxu1 %v5232_v8  ;;  %7204 = vst [vmem:[#allocation9_spill] sm:$0xff] %v6031_v23  ;;  %4540 = vmatprep.mubr.f32.mxu1 %v201_v26  ;;  %v6047_v29 = vld [vmem:[%s6027_s24 + $0x19] sm:$0xff]  ;;  %v5248_v36 = vpack.c.bf16 %v276_v33, %v275_v32  ;;  %v278_v39 = vld [vmem:[%s7171_s1 + $0x68] sm:$0xff]  ;;  %v279_v44 = vld [vmem:[%s7171_s1 + $0x70] sm:$0xff] }
  0x1e   : > { %5363 = vmatpush3.bf16.msra.mxu0 %v5996_v12  ;;  %5237 = vmatprep.subr.bf16.mxu1 %v5236_v16  ;;  %7205 = vst [vmem:[#allocation10_spill] sm:$0xff] %v6052_v31  ;;  %v3872_v35 = vld [vmem:[%s7171_s1 + $0x258] sm:$0xff]  ;;  %v277_v38 = vld [vmem:[%s7171_s1 + $0x60] sm:$0xff]  ;;  %v3874_v41 = vld [vmem:[%s7171_s1 + $0x268] sm:$0xff] }
  0x1f   : > { %5365 = vmatprep.subr.bf16.mxu0 %v6010_v17  ;;  %4860 = vmatprep.mubr.f32.mxu0 %v6047_v29  ;;  %v6068_v37 = vpack.c.bf16 %v3872_v35, %v3871_v34  ;;  %v3873_v40 = vld [vmem:[%s7171_s1 + $0x260] sm:$0xff]  ;;  %v5252_v42 = vpack.c.bf16 %v278_v39, %v277_v38  ;;  %v280_v45 = vld [vmem:[%s7171_s1 + $0x78] sm:$0xff]  ;;  %v3875_v46 = vld [vmem:[%s7171_s1 + $0x270] sm:$0xff] }
  0x20   : > { %v6084_v43 = vpack.c.bf16 %v3874_v41, %v3873_v40  ;;  %v3876_v47 = vld [vmem:[%s7171_s1 + $0x278] sm:$0xff]  ;;  %v5256_v48 = vpack.c.bf16 %v280_v45, %v279_v44  ;;  %v3749_v50 = vld [vmem:[%s7171_s1 + $0x80] sm:$0xff]  ;;  %v3750_v51 = vld [vmem:[%s7171_s1 + $0x88] sm:$0xff] }
  0x21   : > { %5239 = vmatpush3.bf16.msra.mxu1 %v5236_v16  ;;  %7206 = vst [vmem:[#allocation11_spill] sm:$0xff] %v6068_v37  ;;  %v6100_v49 = vpack.c.bf16 %v3876_v47, %v3875_v46  ;;  %v3909_v52 = vld [vmem:[%s7171_s1 + $0x280] sm:$0xff]  ;;  %v3910_v53 = vld [vmem:[%s7171_s1 + $0x288] sm:$0xff]  ;;  %v5260_v54 = vpack.c.bf16 %v3750_v51, %v3749_v50  ;;  %v3911_v56 = vld [vmem:[%s7171_s1 + $0x290] sm:$0xff] }
  0x22   : > { %5367 = vmatpush3.bf16.msra.mxu0 %v6010_v17  ;;  %5241 = vmatprep.subr.bf16.mxu1 %v5240_v22  ;;  %7207 = vst [vmem:[#allocation12_spill] sm:$0xff] %v6084_v43  ;;  %v5388_v55 = vpack.c.bf16 %v3910_v53, %v3909_v52  ;;  %v3912_v57 = vld [vmem:[%s7171_s1 + $0x298] sm:$0xff]  ;;  %v202_v58 = vld [vmem:[%s6027_s24 + $0x8] sm:$0xff]  ;;  %v3751_v59 = vld [vmem:[%s7171_s1 + $0x90] sm:$0xff] }
  0x23   : > { %5369 = vmatprep.subr.bf16.mxu0 %v6031_v23  ;;  %7208 = vst [vmem:[#allocation13_spill] sm:$0xff] %v6100_v49  ;;  %v3752_v60 = vld [vmem:[%s7171_s1 + $0x98] sm:$0xff]  ;;  %v6131_v61 = vld [vmem:[%s6027_s24 + $0x21] sm:$0xff]  ;;  %v5392_v63 = vpack.c.bf16 %v3912_v57, %v3911_v56  ;;  %v6155_v9 = vld [vmem:[%s6027_s24 + $0x30] sm:$0xff] }
  0x24   : > { %v203_v62 = vld [vmem:[%s6027_s24 + $0x18] sm:$0xff]  ;;  %v5264_v1 = vpack.c.bf16 %v3752_v60, %v3751_v59  ;;  %v3913_v2 = vld [vmem:[%s7171_s1 + $0x2a0] sm:$0xff]  ;;  %v3914_v3 = vld [vmem:[%s7171_s1 + $0x2a8] sm:$0xff] }
  0x25   : > { %5243 = vmatpush3.bf16.msra.mxu1 %v5240_v22  ;;  %v6135_v0 = vld [vmem:[%s6027_s24 + $0x31] sm:$0xff]  ;;  %v204_v4 = vld [vmem:[%s6027_s24 + $0x20] sm:$0xff]  ;;  %v3754_v6 = vld [vmem:[%s7171_s1 + $0xa8] sm:$0xff]  ;;  %v5396_v11 = vpack.c.bf16 %v3914_v3, %v3913_v2 }
  0x26   : > { %5371 = vmatpush3.bf16.msra.mxu0 %v6031_v23  ;;  %5245 = vmatprep.subr.bf16.mxu1 %v5244_v30  ;;  %v3753_v5 = vld [vmem:[%s7171_s1 + $0xa0] sm:$0xff]  ;;  %v6159_v10 = vld [vmem:[%s6027_s24 + $0x49] sm:$0xff]  ;;  %v3916_v14 = vld [vmem:[%s7171_s1 + $0x2b8] sm:$0xff] }
  0x27   : > { %5373 = vmatprep.subr.bf16.mxu0 %v6052_v31  ;;  %v6152_v8 = vld [vmem:[%s6027_s24 + $0x39] sm:$0xff]  ;;  %v3915_v13 = vld [vmem:[%s7171_s1 + $0x2b0] sm:$0xff]  ;;  %v5268_v15 = vpack.c.bf16 %v3754_v6, %v3753_v5  ;;  %v6183_v21 = vld [vmem:[%s6027_s24 + $0x48] sm:$0xff] }
  0x28   : > { %v6170_v16 = vld [vmem:[%s6027_s24 + $0x38] sm:$0xff]  ;;  %v3755_v18 = vld [vmem:[%s7171_s1 + $0xb0] sm:$0xff]  ;;  %v6186_v22 = vld [vmem:[%s6027_s24 + $0x61] sm:$0xff]  ;;  %v5400_v24 = vpack.c.bf16 %v3916_v14, %v3915_v13 }
  0x29   : > { %5247 = vmatpush3.bf16.msra.mxu1 %v5244_v30  ;;  %v3756_v19 = vld [vmem:[%s7171_s1 + $0xb8] sm:$0xff]  ;;  %v3917_v25 = vld [vmem:[%s7171_s1 + $0x2c0] sm:$0xff]  ;;  %v3918_v26 = vld [vmem:[%s7171_s1 + $0x2c8] sm:$0xff] }
  0x2a   : > { %5375 = vmatpush3.bf16.msra.mxu0 %v6052_v31  ;;  %5249 = vmatprep.subr.bf16.mxu1 %v5248_v36  ;;  %v6180_v20 = vld [vmem:[%s6027_s24 + $0x51] sm:$0xff]  ;;  %v5272_v27 = vpack.c.bf16 %v3756_v19, %v3755_v18  ;;  %v3757_v30 = vld [vmem:[%s7171_s1 + $0xc0] sm:$0xff]  ;;  %v3758_v32 = vld [vmem:[%s7171_s1 + $0xc8] sm:$0xff] }
  0x2b   : > { %5377 = vmatprep.subr.bf16.mxu0 %v6068_v37  ;;  %v6198_v28 = vld [vmem:[%s6027_s24 + $0x50] sm:$0xff]  ;;  %v6211_v34 = vld [vmem:[%s6027_s24 + $0x60] sm:$0xff]  ;;  %v3920_v39 = vld [vmem:[%s7171_s1 + $0x2d8] sm:$0xff]  ;;  %v5276_v40 = vpack.c.bf16 %v3758_v32, %v3757_v30 }
  0x2c   : > { %v6208_v33 = vld [vmem:[%s6027_s24 + $0x69] sm:$0xff]  ;;  %v6214_v35 = vld [vmem:[%s6027_s24 + $0x79] sm:$0xff]  ;;  %v6236_v45 = vld [vmem:[%s6027_s24 + $0x81] sm:$0xff] }
  0x2d   : > { %5251 = vmatpush3.bf16.msra.mxu1 %v5248_v36  ;;  %v5404_v36 = vpack.c.bf16 %v3918_v26, %v3917_v25  ;;  %v3919_v38 = vld [vmem:[%s7171_s1 + $0x2d0] sm:$0xff]  ;;  %v6226_v41 = vld [vmem:[%s6027_s24 + $0x68] sm:$0xff]  ;;  %v3760_v44 = vld [vmem:[%s7171_s1 + $0xd8] sm:$0xff] }
  0x2e   : > { %5379 = vmatpush3.bf16.msra.mxu0 %v6068_v37  ;;  %5253 = vmatprep.subr.bf16.mxu1 %v5252_v42  ;;  %v6239_v46 = vld [vmem:[%s6027_s24 + $0x78] sm:$0xff]  ;;  %v3921_v50 = vld [vmem:[%s7171_s1 + $0x2e0] sm:$0xff]  ;;  %v3922_v51 = vld [vmem:[%s7171_s1 + $0x2e8] sm:$0xff] }
  0x2f   : > { %5381 = vmatprep.subr.bf16.mxu0 %v6084_v43  ;;  %v6242_v47 = vld [vmem:[%s6027_s24 + $0x91] sm:$0xff]  ;;  %v6254_v53 = vld [vmem:[%s6027_s24 + $0x80] sm:$0xff]  ;;  %v5412_v59 = vpack.c.bf16 %v3922_v51, %v3921_v50  ;;  %v6295_v5 = vld [vmem:[%s6027_s24 + $0xa8] sm:$0xff] }
  0x30   : > { %v6264_v56 = vld [vmem:[%s6027_s24 + $0x99] sm:$0xff]  ;;  %v6267_v57 = vld [vmem:[%s6027_s24 + $0x90] sm:$0xff]  ;;  %v6298_v6 = vld [vmem:[%s6027_s24 + $0xc1] sm:$0xff] }
  0x31   : > { %5255 = vmatpush3.bf16.msra.mxu1 %v5252_v42  ;;  %v3759_v42 = vld [vmem:[%s7171_s1 + $0xd0] sm:$0xff]  ;;  %v3764_v3 = vld [vmem:[%s7171_s1 + $0xf8] sm:$0xff]  ;;  %v3957_v13 = vld [vmem:[%s7171_s1 + $0x300] sm:$0xff] }
  0x32   : > { %5383 = vmatpush3.bf16.msra.mxu0 %v6084_v43  ;;  %5257 = vmatprep.subr.bf16.mxu1 %v5256_v48  ;;  %v5280_v52 = vpack.c.bf16 %v3760_v44, %v3759_v42  ;;  %v3923_v60 = vld [vmem:[%s7171_s1 + $0x2f0] sm:$0xff]  ;;  %v3958_v14 = vld [vmem:[%s7171_s1 + $0x308] sm:$0xff]  ;;  %v3765_v19 = vld [vmem:[%s7171_s1 + $0x100] sm:$0xff] }
  0x33   : > { %5385 = vmatprep.subr.bf16.mxu0 %v6100_v49  ;;  %v3763_v2 = vld [vmem:[%s7171_s1 + $0xf0] sm:$0xff]  ;;  %v6323_v26 = vld [vmem:[%s6027_s24 + $0xc0] sm:$0xff]  ;;  %v5420_v30 = vpack.c.bf16 %v3958_v14, %v3957_v13  ;;  %v6347_v42 = vld [vmem:[%s6027_s24 + $0xd8] sm:$0xff] }
  0x34   : > { %v6310_v18 = vld [vmem:[%s6027_s24 + $0xb0] sm:$0xff]  ;;  %v3961_v50 = vld [vmem:[%s7171_s1 + $0x320] sm:$0xff]  ;;  %v3962_v51 = vld [vmem:[%s7171_s1 + $0x328] sm:$0xff] }
  0x35   : > { %5259 = vmatpush3.bf16.msra.mxu1 %v5256_v48  ;;  %v5408_v48 = vpack.c.bf16 %v3920_v39, %v3919_v38  ;;  %v6320_v25 = vld [vmem:[%s6027_s24 + $0xc9] sm:$0xff]  ;;  %v6350_v44 = vld [vmem:[%s6027_s24 + $0x32] sm:$0xff] }
  0x36   : > { %5387 = vmatpush3.bf16.msra.mxu0 %v6100_v49  ;;  %5261 = vmatprep.subr.bf16.mxu1 %v5260_v54  ;;  %v3959_v32 = vld [vmem:[%s7171_s1 + $0x310] sm:$0xff]  ;;  %v6340_v39 = vld [vmem:[%s6027_s24 + $0xc8] sm:$0xff]  ;;  %v3969_v49 = vld [vmem:[%s7171_s1 + $0x360] sm:$0xff] }
  0x37   : > { %5389 = vmatprep.subr.bf16.mxu0 %v5388_v55  ;;  %v6395_v13 = vld [vmem:[%s6027_s24 + $0x62] sm:$0xff]  ;;  %v6461_v37 = vld [vmem:[%s6027_s24 + $0xaa] sm:$0xff]  ;;  %v3972_v17 = vld [vmem:[%s7171_s1 + $0x378] sm:$0xff] }
  0x38   : > { %4541 = vmatmul.mubr.f32.vlgmr.msra.gmra.mrb[0].mxu1 %v202_v58  ;;  %v6270_v58 = vld [vmem:[%s6027_s24 + $0xa9] sm:$0xff]  ;;  %7212 = vst [vmem:[#allocation17_spill] sm:$0xff] %v6461_v37 }
  0x39   : > { %4861 = vmatmul.mubr.f32.vlgmr.msra.gmra.mrb[0].mxu0 %v6131_v61  ;;  %5263 = vmatpush3.bf16.msra.mxu1 %v5260_v54  ;;  %v3761_v54 = vld [vmem:[%s7171_s1 + $0xe0] sm:$0xff]  ;;  %v3970_v43 = vld [vmem:[%s7171_s1 + $0x368] sm:$0xff]  ;;  %v3971_v23 = vld [vmem:[%s7171_s1 + $0x370] sm:$0xff] }
  0x3a   : > { %5391 = vmatpush3.bf16.msra.mxu0 %v5388_v55  ;;  %4543 = vmatprep.mubr.f32.mxu1 %v203_v62  ;;  %v3762_v55 = vld [vmem:[%s7171_s1 + $0xe8] sm:$0xff]  ;;  %v3924_v62 = vld [vmem:[%s7171_s1 + $0x2f8] sm:$0xff]  ;;  %v5444_v31 = vpack.c.bf16 %v3970_v43, %v3969_v49  ;;  %v5448_v7 = vpack.c.bf16 %v3972_v17, %v3971_v23 }
  0x3b   : > { %4863 = vmatprep.mubr.f32.mxu0 %v6135_v0  ;;  %5393 = vmatprep.subr.bf16.mxu0 %v5392_v63  ;;  %v6477_v43 = vld [vmem:[%s6027_s24 + $0xb2] sm:$0xff]  ;;  %v6480_v49 = vld [vmem:[%s6027_s24 + $0x168] sm:$0xff] }
  0x3c   : > { %4544 = vmatmul.mubr.f32.gmra.mrb[2].mxu1 %v204_v4  ;;  %5265 = vmatprep.subr.bf16.mxu1 %v5264_v1  ;;  %v6292_v4 = vld [vmem:[%s6027_s24 + $0xb1] sm:$0xff]  ;;  %7213 = vst [vmem:[#allocation18_spill] sm:$0xff] %v6477_v43  ;;  %7214 = vst [vmem:[#allocation19_spill] sm:$0xff] %v6480_v49  ;;  %v6483_v12 = vld [vmem:[%s6027_s24 + $0xc2] sm:$0xff] }
  0x3d   : > { %4864 = vmatmul.mubr.f32.gmra.mrb[2].mxu0 %v6152_v8  ;;  %4546 = vmatprep.mubr.f32.mxu1 %v6155_v9  ;;  %7215 = vst [vmem:[#allocation20_spill] sm:$0xff] %v6483_v12  ;;  %v6499_v17 = vld [vmem:[%s6027_s24 + $0xca] sm:$0xff]  ;;  %v570_v23 = vld [vmem:[%s6027_s24 + $0x1] sm:$0xff] }
  0x3e   : > { %5395 = vmatpush3.bf16.msra.mxu0 %v5392_v63  ;;  %4866 = vmatprep.mubr.f32.mxu0 %v6159_v10  ;;  %v5284_v63 = vpack.c.bf16 %v3762_v55, %v3761_v54  ;;  %v6367_v54 = vld [vmem:[%s6027_s24 + $0x3a] sm:$0xff]  ;;  %v6370_v55 = vld [vmem:[%s6027_s24 + $0xf0] sm:$0xff] }
  0x3f   : > { %5397 = vmatprep.subr.bf16.mxu0 %v5396_v11  ;;  %5267 = vmatpush3.bf16.msra.mxu1 %v5264_v1  ;;  %v6282_v1 = vld [vmem:[%s6027_s24 + $0x98] sm:$0xff] }
  0x40   : > { %4547 = vmatmul.mubr.f32.gmra.mrb[4].mxu1 %v6170_v16  ;;  %5269 = vmatprep.subr.bf16.mxu1 %v5268_v15 }
  0x41   : > { %4867 = vmatmul.mubr.f32.gmra.mrb[4].mxu0 %v6180_v20  ;;  %4549 = vmatprep.mubr.f32.mxu1 %v6183_v21 }
  0x42   : > { %5399 = vmatpush3.bf16.msra.mxu0 %v5396_v11  ;;  %4869 = vmatprep.mubr.f32.mxu0 %v6186_v22  ;;  %v5416_v11 = vpack.c.bf16 %v3924_v62, %v3923_v60  ;;  %v5428_v60 = vpack.c.bf16 %v3962_v51, %v3961_v50  ;;  %v3963_v62 = vld [vmem:[%s7171_s1 + $0x330] sm:$0xff]  ;;  %v3968_v51 = vld [vmem:[%s7171_s1 + $0x358] sm:$0xff] }
  0x43   : > { %5401 = vmatprep.subr.bf16.mxu0 %v5400_v24  ;;  %5271 = vmatpush3.bf16.msra.mxu1 %v5268_v15  ;;  %v5288_v15 = vpack.c.bf16 %v3764_v3, %v3763_v2  ;;  %v6385_v2 = vld [vmem:[%s6027_s24 + $0xf8] sm:$0xff]  ;;  %v3967_v50 = vld [vmem:[%s7171_s1 + $0x350] sm:$0xff] }
  0x44   : > { %4550 = vmatmul.mubr.f32.gmra.mrb[6].mxu1 %v6198_v28  ;;  %5273 = vmatprep.subr.bf16.mxu1 %v5272_v27  ;;  %v6389_v3 = vld [vmem:[%s6027_s24 + $0x52] sm:$0xff] }
  0x45   : > { %4870 = vmatmul.mubr.f32.gmra.mrb[6].mxu0 %v6208_v33  ;;  %4552 = vmatprep.mubr.f32.mxu1 %v6211_v34 }
  0x46   : > { %5403 = vmatpush3.bf16.msra.mxu0 %v5400_v24  ;;  %4872 = vmatprep.mubr.f32.mxu0 %v6214_v35  ;;  %v3766_v24 = vld [vmem:[%s7171_s1 + $0x108] sm:$0xff] }
  0x47   : > { %5405 = vmatprep.subr.bf16.mxu0 %v5404_v36  ;;  %5275 = vmatpush3.bf16.msra.mxu1 %v5272_v27  ;;  %v6326_v27 = vld [vmem:[%s6027_s24 + $0x1a] sm:$0xff]  ;;  %v6335_v38 = vpack.c.bf16 %v3766_v24, %v3765_v19  ;;  %v3966_v19 = vld [vmem:[%s7171_s1 + $0x348] sm:$0xff]  ;;  %v6407_v24 = vld [vmem:[%s6027_s24 + $0x110] sm:$0xff] }
  0x48   : > { %4553 = vmatmul.mubr.f32.gmra.mrb[8].mxu1 %v6226_v41  ;;  %5277 = vmatprep.subr.bf16.mxu1 %v5276_v40 }
  0x49   : > { %4873 = vmatmul.mubr.f32.gmra.mrb[8].mxu0 %v6236_v45  ;;  %4555 = vmatprep.mubr.f32.mxu1 %v6239_v46 }
  0x4a   : > { %5407 = vmatpush3.bf16.msra.mxu0 %v5404_v36  ;;  %4875 = vmatprep.mubr.f32.mxu0 %v6242_v47  ;;  %v3960_v36 = vld [vmem:[%s7171_s1 + $0x318] sm:$0xff] }
  0x4b   : > { %5409 = vmatprep.subr.bf16.mxu0 %v5408_v48  ;;  %5279 = vmatpush3.bf16.msra.mxu1 %v5276_v40  ;;  %v6344_v40 = vld [vmem:[%s6027_s24 + $0x22] sm:$0xff] }
  0x4c   : > { %4556 = vmatmul.mubr.f32.gmra.mrb[10].mxu1 %v6254_v53  ;;  %5281 = vmatprep.subr.bf16.mxu1 %v5280_v52 }
  0x4d   : > { %4876 = vmatmul.mubr.f32.gmra.mrb[10].mxu0 %v6264_v56  ;;  %4558 = vmatprep.mubr.f32.mxu1 %v6267_v57 }
  0x4e   : > { %5411 = vmatpush3.bf16.msra.mxu0 %v5408_v48  ;;  %4878 = vmatprep.mubr.f32.mxu0 %v6270_v58  ;;  %v5424_v48 = vpack.c.bf16 %v3960_v36, %v3959_v32  ;;  %v6414_v32 = vld [vmem:[%s6027_s24 + $0x120] sm:$0xff] }
  0x4f   : > { %5413 = vmatprep.subr.bf16.mxu0 %v5412_v59  ;;  %5283 = vmatpush3.bf16.msra.mxu1 %v5280_v52  ;;  %v6363_v52 = vld [vmem:[%s6027_s24 + $0xe0] sm:$0xff] }
  0x50   : > { %4559 = vmatmul.mubr.f32.gmra.mrb[12].mxu1 %v6282_v1  ;;  %5285 = vmatprep.subr.bf16.mxu1 %v5284_v63  ;;  %v6417_v36 = vld [vmem:[%s6027_s24 + $0x7a] sm:$0xff] }
  0x51   : > { %4879 = vmatmul.mubr.f32.gmra.mrb[12].mxu0 %v6292_v4  ;;  %4561 = vmatprep.mubr.f32.mxu1 %v6295_v5 }
  0x52   : > { %5415 = vmatpush3.bf16.msra.mxu0 %v5412_v59  ;;  %4881 = vmatprep.mubr.f32.mxu0 %v6298_v6  ;;  %v6373_v59 = vld [vmem:[%s6027_s24 + $0x4a] sm:$0xff] }
  0x53   : > { %5417 = vmatprep.subr.bf16.mxu0 %v5416_v11  ;;  %5287 = vmatpush3.bf16.msra.mxu1 %v5284_v63  ;;  %v3964_v63 = vld [vmem:[%s7171_s1 + $0x338] sm:$0xff] }
  0x54   : > { %4562 = vmatmul.mubr.f32.gmra.mrb[14].mxu1 %v6310_v18  ;;  %5289 = vmatprep.subr.bf16.mxu1 %v5288_v15  ;;  %v5432_v14 = vpack.c.bf16 %v3964_v63, %v3963_v62  ;;  %v6433_v62 = vld [vmem:[%s6027_s24 + $0x82] sm:$0xff]  ;;  %v6436_v63 = vld [vmem:[%s6027_s24 + $0x138] sm:$0xff] }
  0x55   : > { %4882 = vmatmul.mubr.f32.gmra.mrb[14].mxu0 %v6320_v25  ;;  %4564 = vmatprep.mubr.f32.mxu1 %v6323_v26  ;;  %7209 = vst [vmem:[#allocation14_spill] sm:$0xff] %v6433_v62 }
  0x56   : > { %5419 = vmatpush3.bf16.msra.mxu0 %v5416_v11  ;;  %4940 = vmatprep.mubr.f32.mxu0 %v6326_v27  ;;  %v6392_v11 = vld [vmem:[%s6027_s24 + $0x108] sm:$0xff] }
  0x57   : > { %5421 = vmatprep.subr.bf16.mxu0 %v5420_v30  ;;  %5291 = vmatpush3.bf16.msra.mxu1 %v5288_v15  ;;  %v3965_v15 = vld [vmem:[%s7171_s1 + $0x340] sm:$0xff] }
  0x58   : > { %4565 = vmatmul.mubr.f32.gmra.mrb[16].mxu1 %v6340_v39  ;;  %5293 = vmatprep.subr.bf16.mxu1 %v6335_v38 }
  0x59   : > { %4941 = vmatmul.mubr.f32.vlgmr.msra.gmra.mrb[0].mxu0 %v6344_v40  ;;  %4567 = vmatprep.mubr.f32.mxu1 %v6347_v42 }
  0x5a   : > { %5423 = vmatpush3.bf16.msra.mxu0 %v5420_v30  ;;  %4943 = vmatprep.mubr.f32.mxu0 %v6350_v44  ;;  %v6411_v30 = vld [vmem:[%s6027_s24 + $0x6a] sm:$0xff] }
  0x5b   : > { %5425 = vmatprep.subr.bf16.mxu0 %v5424_v48 }
  0x5c   : > { %4568 = vmatmul.mubr.f32.gmra.mrb[18].mxu1 %v6363_v52 }
  0x5d   : > { %4944 = vmatmul.mubr.f32.gmra.mrb[2].mxu0 %v6367_v54  ;;  %4570 = vmatprep.mubr.f32.mxu1 %v6370_v55 }
  0x5e   : > { %4946 = vmatprep.mubr.f32.mxu0 %v6373_v59  ;;  %5427 = vmatpush3.bf16.msra.mxu0 %v5424_v48  ;;  %v5436_v48 = vpack.c.bf16 %v3966_v19, %v3965_v15  ;;  %v6439_v15 = vld [vmem:[%s6027_s24 + $0x92] sm:$0xff]  ;;  %v5440_v19 = vpack.c.bf16 %v3968_v51, %v3967_v50  ;;  %v6455_v50 = vld [vmem:[%s6027_s24 + $0x9a] sm:$0xff] }
  0x5f   : > { %5429 = vmatprep.subr.bf16.mxu0 %v5428_v60  ;;  %7210 = vst [vmem:[#allocation15_spill] sm:$0xff] %v6439_v15  ;;  %7211 = vst [vmem:[#allocation16_spill] sm:$0xff] %v6455_v50  ;;  %v6458_v51 = vld [vmem:[%s6027_s24 + $0x150] sm:$0xff] }
  0x60   : > { %4571 = vmatmul.mubr.f32.gmra.mrb[20].mxu1 %v6385_v2 }
  0x61   : > { %4947 = vmatmul.mubr.f32.gmra.mrb[4].mxu0 %v6389_v3  ;;  %4573 = vmatprep.mubr.f32.mxu1 %v6392_v11 }
  0x62   : > { %4949 = vmatprep.mubr.f32.mxu0 %v6395_v13  ;;  %5431 = vmatpush3.bf16.msra.mxu0 %v5428_v60  ;;  %v6429_v60 = vld [vmem:[%s6027_s24 + $0x128] sm:$0xff] }
  0x63   : > { %5433 = vmatprep.subr.bf16.mxu0 %v5432_v14 }
  0x64   : > { %4574 = vmatmul.mubr.f32.gmra.mrb[22].mxu1 %v6407_v24 }
  0x65   : > { %4950 = vmatmul.mubr.f32.gmra.mrb[6].mxu0 %v6411_v30  ;;  %4576 = vmatprep.mubr.f32.mxu1 %v6414_v32 }
  0x66   : > { %4952 = vmatprep.mubr.f32.mxu0 %v6417_v36  ;;  %5435 = vmatpush3.bf16.msra.mxu0 %v5432_v14  ;;  %v6451_v14 = vld [vmem:[%s6027_s24 + $0x140] sm:$0xff] }
  0x67   : > { %5437 = vmatprep.subr.bf16.mxu0 %v5436_v48 }
  0x68   : > { %4577 = vmatmul.mubr.f32.gmra.mrb[24].mxu1 %v6429_v60 }
  0x69   : > { %4953 = vmatmul.mubr.f32.gmra.mrb[8].mxu0 %v6433_v62  ;;  %4579 = vmatprep.mubr.f32.mxu1 %v6436_v63 }
  0x6a   : > { %4955 = vmatprep.mubr.f32.mxu0 %v6439_v15  ;;  %5439 = vmatpush3.bf16.msra.mxu0 %v5436_v48  ;;  %v6473_v48 = vld [vmem:[%s6027_s24 + $0x158] sm:$0xff] }
  0x6b   : > { %5441 = vmatprep.subr.bf16.mxu0 %v5440_v19  ;;  %v6503_v15 = vld [vmem:[%s6027_s24 + $0xda] sm:$0xff] }
  0x6c   : > { %4580 = vmatmul.mubr.f32.gmra.mrb[26].mxu1 %v6451_v14 }
  0x6d   : > { %4956 = vmatmul.mubr.f32.gmra.mrb[10].mxu0 %v6455_v50  ;;  %4582 = vmatprep.mubr.f32.mxu1 %v6458_v51  ;;  %v4005_v50 = vld [vmem:[%s7171_s1 + $0x380] sm:$0xff] }
  0x6e   : > { %4958 = vmatprep.mubr.f32.mxu0 %v6461_v37  ;;  %5443 = vmatpush3.bf16.msra.mxu0 %v5440_v19  ;;  %v4006_v37 = vld [vmem:[%s7171_s1 + $0x388] sm:$0xff]  ;;  %v6495_v19 = vld [vmem:[%s6027_s24 + $0x170] sm:$0xff] }
  0x6f   : > { %5445 = vmatprep.subr.bf16.mxu0 %v5444_v31  ;;  %7216 = vst [vmem:[#allocation21_spill] sm:$0xff] %v6495_v19  ;;  %v6505_v62 = vpack.c.bf16 %v4006_v37, %v4005_v50  ;;  %v6518_v37 = vld [vmem:[%s6027_s24 + $0xe2] sm:$0xff]  ;;  %v6521_v50 = vld [vmem:[%s6027_s24 + $0xf2] sm:$0xff] }
  0x70   : > { %4583 = vmatmul.mubr.f32.gmra.mrb[28].mxu1 %v6473_v48 }
  0x71   : > { %4959 = vmatmul.mubr.f32.gmra.mrb[12].mxu0 %v6477_v43  ;;  %4585 = vmatprep.mubr.f32.mxu1 %v6480_v49  ;;  %v3767_v43 = vld [vmem:[%s7171_s1 + $0x110] sm:$0xff]  ;;  %v3769_v49 = vld [vmem:[%s7171_s1 + $0x120] sm:$0xff] }
  0x72   : > { %4961 = vmatprep.mubr.f32.mxu0 %v6483_v12  ;;  %5447 = vmatpush3.bf16.msra.mxu0 %v5444_v31  ;;  %v3768_v12 = vld [vmem:[%s7171_s1 + $0x118] sm:$0xff]  ;;  %v571_v31 = vld [vmem:[%s6027_s24 + $0x9] sm:$0xff] }
  0x73   : > { %5449 = vmatprep.subr.bf16.mxu0 %v5448_v7 }
  0x74   : > { %4586 = vmatmul.mubr.f32.gmra.mrb[30].mxu1 %v6495_v19  ;;  %v5296_v19 = vpack.c.bf16 %v3768_v12, %v3767_v43  ;;  %v6538_v12 = vld [vmem:[%s6027_s24 + $0x10a] sm:$0xff] }
  0x75   : > { %4962 = vmatmul.mubr.f32.gmra.mrb[14].mxu0 %v6499_v17  ;;  %4620 = vmatprep.mubr.f32.mxu1 %v570_v23  ;;  %v3770_v23 = vld [vmem:[%s7171_s1 + $0x128] sm:$0xff] }
  0x76   : > { %4964 = vmatprep.mubr.f32.mxu0 %v6503_v15  ;;  %5451 = vmatpush3.bf16.msra.mxu0 %v5448_v7  ;;  %v6535_v7 = vld [vmem:[%s6027_s24 + $0xfa] sm:$0xff]  ;;  %v5300_v43 = vpack.c.bf16 %v3770_v23, %v3769_v49 }
  0x77   : > { %5453 = vmatprep.subr.bf16.mxu0 %v6505_v62  ;;  %v3773_v23 = vld [vmem:[%s7171_s1 + $0x140] sm:$0xff] }
  0x78   : > { %4621 = vmatmul.mubr.f32.vlgmr.msra.gmra.mrb[0].mxu1 %v571_v31  ;;  %v3771_v31 = vld [vmem:[%s7171_s1 + $0x130] sm:$0xff] }
  0x79   : > { %4965 = vmatmul.mubr.f32.gmra.mrb[16].mxu0 %v6518_v37  ;;  %5295 = vmatpush3.bf16.msra.mxu1 %v6335_v38  ;;  %v3772_v38 = vld [vmem:[%s7171_s1 + $0x138] sm:$0xff] }
  0x7a   : > { %4623 = vmatprep.mubr.f32.mxu1 %v6047_v29  ;;  %4967 = vmatprep.mubr.f32.mxu0 %v6521_v50  ;;  %v6551_v29 = vld [vmem:[%s6027_s24 + $0x112] sm:$0xff]  ;;  %v5304_v49 = vpack.c.bf16 %v3772_v38, %v3771_v31 }
  0x7b   : > { %5297 = vmatprep.subr.bf16.mxu1 %v5296_v19  ;;  %v3775_v38 = vld [vmem:[%s7171_s1 + $0x150] sm:$0xff] }
  0x7c   : > { %4624 = vmatmul.mubr.f32.gmra.mrb[2].mxu1 %v6131_v61  ;;  %v6554_v61 = vld [vmem:[%s6027_s24 + $0x122] sm:$0xff] }
  0x7d   : > { %4968 = vmatmul.mubr.f32.gmra.mrb[18].mxu0 %v6535_v7  ;;  %4626 = vmatprep.mubr.f32.mxu1 %v6135_v0  ;;  %v3774_v0 = vld [vmem:[%s7171_s1 + $0x148] sm:$0xff] }
  0x7e   : > { %4970 = vmatprep.mubr.f32.mxu0 %v6538_v12  ;;  %5299 = vmatpush3.bf16.msra.mxu1 %v5296_v19  ;;  %v6567_v19 = vld [vmem:[%s6027_s24 + $0x12a] sm:$0xff]  ;;  %v5308_v31 = vpack.c.bf16 %v3774_v0, %v3773_v23  ;;  %v3777_v0 = vld [vmem:[%s7171_s1 + $0x160] sm:$0xff] }
  0x7f   : > { %5301 = vmatprep.subr.bf16.mxu1 %v5300_v43 }
  0x80   : > { %4627 = vmatmul.mubr.f32.gmra.mrb[4].mxu1 %v6152_v8  ;;  %v6570_v8 = vld [vmem:[%s6027_s24 + $0x13a] sm:$0xff] }
  0x81   : > { %4971 = vmatmul.mubr.f32.gmra.mrb[20].mxu0 %v6551_v29  ;;  %4629 = vmatprep.mubr.f32.mxu1 %v6159_v10  ;;  %v3776_v10 = vld [vmem:[%s7171_s1 + $0x158] sm:$0xff] }
  0x82   : > { %4973 = vmatprep.mubr.f32.mxu0 %v6554_v61  ;;  %5303 = vmatpush3.bf16.msra.mxu1 %v5300_v43  ;;  %v6583_v43 = vld [vmem:[%s6027_s24 + $0x142] sm:$0xff]  ;;  %v5312_v23 = vpack.c.bf16 %v3776_v10, %v3775_v38  ;;  %v3779_v10 = vld [vmem:[%s7171_s1 + $0x170] sm:$0xff] }
  0x83   : > { %5305 = vmatprep.subr.bf16.mxu1 %v5304_v49 }
  0x84   : > { %4630 = vmatmul.mubr.f32.gmra.mrb[6].mxu1 %v6180_v20  ;;  %v6586_v20 = vld [vmem:[%s6027_s24 + $0x152] sm:$0xff] }
  0x85   : > { %4974 = vmatmul.mubr.f32.gmra.mrb[22].mxu0 %v6567_v19  ;;  %4632 = vmatprep.mubr.f32.mxu1 %v6186_v22  ;;  %v3778_v22 = vld [vmem:[%s7171_s1 + $0x168] sm:$0xff] }
  0x86   : > { %4976 = vmatprep.mubr.f32.mxu0 %v6570_v8  ;;  %5307 = vmatpush3.bf16.msra.mxu1 %v5304_v49  ;;  %v6599_v49 = vld [vmem:[%s6027_s24 + $0x15a] sm:$0xff]  ;;  %v5316_v38 = vpack.c.bf16 %v3778_v22, %v3777_v0  ;;  %v3907_v0 = vld [vmem:[%s6027_s24 + $0x182] sm:$0xff] }
  0x87   : > { %5309 = vmatprep.subr.bf16.mxu1 %v5308_v31  ;;  %7217 = vst [vmem:[#allocation22_spill] sm:$0xff] %v6599_v49  ;;  %v3813_v22 = vld [vmem:[%s7171_s1 + $0x180] sm:$0xff] }
  0x88   : > { %4633 = vmatmul.mubr.f32.gmra.mrb[8].mxu1 %v6208_v33  ;;  %v6602_v33 = vld [vmem:[%s6027_s24 + $0x16a] sm:$0xff] }
  0x89   : > { %4977 = vmatmul.mubr.f32.gmra.mrb[24].mxu0 %v6583_v43  ;;  %4635 = vmatprep.mubr.f32.mxu1 %v6214_v35  ;;  %v3780_v35 = vld [vmem:[%s7171_s1 + $0x178] sm:$0xff] }
  0x8a   : > { %4979 = vmatprep.mubr.f32.mxu0 %v6586_v20  ;;  %5311 = vmatpush3.bf16.msra.mxu1 %v5308_v31  ;;  %v6615_v31 = vld [vmem:[%s6027_s24 + $0x172] sm:$0xff] }
  0x8b   : > { %5313 = vmatprep.subr.bf16.mxu1 %v5312_v23 }
  0x8c   : > { %4636 = vmatmul.mubr.f32.gmra.mrb[10].mxu1 %v6236_v45  ;;  %v5320_v45 = vpack.c.bf16 %v3780_v35, %v3779_v10  ;;  %v4008_v35 = vld [vmem:[%s7171_s1 + $0x398] sm:$0xff] }
  0x8d   : > { %4980 = vmatmul.mubr.f32.gmra.mrb[26].mxu0 %v6599_v49  ;;  %4638 = vmatprep.mubr.f32.mxu1 %v6242_v47  ;;  %v3814_v49 = vld [vmem:[%s7171_s1 + $0x188] sm:$0xff] }
  0x8e   : > { %4982 = vmatprep.mubr.f32.mxu0 %v6602_v33  ;;  %5315 = vmatpush3.bf16.msra.mxu1 %v5312_v23  ;;  %v3908_v23 = vld [vmem:[%s6027_s24 + $0x18a] sm:$0xff]  ;;  %v6628_v10 = vpack.c.bf16 %v3814_v49, %v3813_v22  ;;  %v4012_v22 = vld [vmem:[%s7171_s1 + $0x3b8] sm:$0xff] }
  0x8f   : > { %5317 = vmatprep.subr.bf16.mxu1 %v5316_v38 }
  0x90   : > { %4639 = vmatmul.mubr.f32.gmra.mrb[12].mxu1 %v6264_v56  ;;  %v4007_v56 = vld [vmem:[%s7171_s1 + $0x390] sm:$0xff] }
  0x91   : > { %4983 = vmatmul.mubr.f32.gmra.mrb[28].mxu0 %v6615_v31  ;;  %4641 = vmatprep.mubr.f32.mxu1 %v6270_v58  ;;  %v6640_v58 = vld [vmem:[%s6027_s24 + $0xd9] sm:$0xff]  ;;  %v5456_v49 = vpack.c.bf16 %v4008_v35, %v4007_v56  ;;  %v6690_v35 = vld [vmem:[%s6027_s24 + $0x121] sm:$0xff] }
  0x92   : > { %4985 = vmatprep.mubr.f32.mxu0 %v3907_v0  ;;  %5319 = vmatpush3.bf16.msra.mxu1 %v5316_v38  ;;  %v4010_v38 = vld [vmem:[%s7171_s1 + $0x3a8] sm:$0xff]  ;;  %v6658_v0 = vld [vmem:[%s6027_s24 + $0xf1] sm:$0xff]  ;;  %v4013_v56 = vld [vmem:[%s7171_s1 + $0x3c0] sm:$0xff] }
  0x93   : > { %5321 = vmatprep.subr.bf16.mxu1 %v5320_v45 }
  0x94   : > { %4642 = vmatmul.mubr.f32.gmra.mrb[14].mxu1 %v6292_v4  ;;  %v4009_v4 = vld [vmem:[%s7171_s1 + $0x3a0] sm:$0xff] }
  0x95   : > { %4986 = vmatmul.mubr.f32.gmra.mrb[30].mxu0 %v3908_v23  ;;  %4644 = vmatprep.mubr.f32.mxu1 %v6298_v6 }
  0x96   : > { %5020 = vmatprep.mubr.f32.mxu0 %v6155_v9  ;;  %5323 = vmatpush3.bf16.msra.mxu1 %v5320_v45  ;;  %v6653_v9 = vld [vmem:[%s6027_s24 + $0xe1] sm:$0xff]  ;;  %v5460_v45 = vpack.c.bf16 %v4010_v38, %v4009_v4  ;;  %v4015_v4 = vld [vmem:[%s7171_s1 + $0x3d0] sm:$0xff]  ;;  %v6706_v38 = vld [vmem:[%s6027_s24 + $0x139] sm:$0xff] }
  0x97   : > { %5325 = vmatprep.subr.bf16.mxu1 %v6628_v10 }
  0x98   : > { %4645 = vmatmul.mubr.f32.gmra.mrb[16].mxu1 %v6320_v25 }
  0x99   : > { %5021 = vmatmul.mubr.f32.vlgmr.msra.gmra.mrb[0].mxu0 %v6170_v16  ;;  %4647 = vmatprep.mubr.f32.mxu1 %v6640_v58  ;;  %v4011_v16 = vld [vmem:[%s7171_s1 + $0x3b0] sm:$0xff] }
  0x9a   : > { %5455 = vmatpush3.bf16.msra.mxu0 %v6505_v62  ;;  %5023 = vmatprep.mubr.f32.mxu0 %v6183_v21  ;;  %v6670_v21 = vld [vmem:[%s6027_s24 + $0xf9] sm:$0xff]  ;;  %v6674_v62 = vld [vmem:[%s6027_s24 + $0x109] sm:$0xff]  ;;  %v5464_v23 = vpack.c.bf16 %v4012_v22, %v4011_v16  ;;  %v6722_v22 = vld [vmem:[%s6027_s24 + $0x151] sm:$0xff] }
  0x9b   : > { %5457 = vmatprep.subr.bf16.mxu0 %v5456_v49  ;;  %v4017_v16 = vld [vmem:[%s7171_s1 + $0x3e0] sm:$0xff] }
  0x9c   : > { %4648 = vmatmul.mubr.f32.gmra.mrb[18].mxu1 %v6653_v9 }
  0x9d   : > { %5024 = vmatmul.mubr.f32.gmra.mrb[2].mxu0 %v6198_v28  ;;  %4650 = vmatprep.mubr.f32.mxu1 %v6658_v0  ;;  %v4014_v28 = vld [vmem:[%s7171_s1 + $0x3c8] sm:$0xff] }
  0x9e   : > { %5026 = vmatprep.mubr.f32.mxu0 %v6211_v34  ;;  %5459 = vmatpush3.bf16.msra.mxu0 %v5456_v49  ;;  %v6686_v34 = vld [vmem:[%s6027_s24 + $0x111] sm:$0xff]  ;;  %v5468_v49 = vpack.c.bf16 %v4014_v28, %v4013_v56  ;;  %v6738_v28 = vld [vmem:[%s6027_s24 + $0x169] sm:$0xff] }
  0x9f   : > { %5461 = vmatprep.subr.bf16.mxu0 %v5460_v45  ;;  %v4019_v56 = vld [vmem:[%s7171_s1 + $0x3f0] sm:$0xff] }
  0xa0   : > { %4651 = vmatmul.mubr.f32.gmra.mrb[20].mxu1 %v6670_v21 }
  0xa1   : > { %5027 = vmatmul.mubr.f32.gmra.mrb[4].mxu0 %v6226_v41  ;;  %4653 = vmatprep.mubr.f32.mxu1 %v6674_v62  ;;  %v4016_v41 = vld [vmem:[%s7171_s1 + $0x3d8] sm:$0xff] }
  0xa2   : > { %5029 = vmatprep.mubr.f32.mxu0 %v6239_v46  ;;  %5463 = vmatpush3.bf16.msra.mxu0 %v5460_v45  ;;  %v6702_v46 = vld [vmem:[%s6027_s24 + $0x129] sm:$0xff]  ;;  %v5472_v45 = vpack.c.bf16 %v4016_v41, %v4015_v4  ;;  %v4053_v4 = vld [vmem:[%s7171_s1 + $0x400] sm:$0xff] }
  0xa3   : > { %5465 = vmatprep.subr.bf16.mxu0 %v5464_v23  ;;  %v940_v41 = vld [vmem:[%s6027_s24 + $0x2] sm:$0xff] }
  0xa4   : > { %4654 = vmatmul.mubr.f32.gmra.mrb[22].mxu1 %v6686_v34 }
  0xa5   : > { %5030 = vmatmul.mubr.f32.gmra.mrb[6].mxu0 %v6254_v53  ;;  %4656 = vmatprep.mubr.f32.mxu1 %v6690_v35  ;;  %v4018_v53 = vld [vmem:[%s7171_s1 + $0x3e8] sm:$0xff] }
  0xa6   : > { %5032 = vmatprep.mubr.f32.mxu0 %v6267_v57  ;;  %5467 = vmatpush3.bf16.msra.mxu0 %v5464_v23  ;;  %v6718_v57 = vld [vmem:[%s6027_s24 + $0x141] sm:$0xff]  ;;  %v5476_v23 = vpack.c.bf16 %v4018_v53, %v4017_v16  ;;  %v3815_v16 = vld [vmem:[%s7171_s1 + $0x190] sm:$0xff] }
  0xa7   : > { %5469 = vmatprep.subr.bf16.mxu0 %v5468_v49  ;;  %v941_v53 = vld [vmem:[%s6027_s24 + $0xa] sm:$0xff] }
  0xa8   : > { %4657 = vmatmul.mubr.f32.gmra.mrb[24].mxu1 %v6702_v46 }
  0xa9   : > { %5033 = vmatmul.mubr.f32.gmra.mrb[8].mxu0 %v6282_v1  ;;  %4659 = vmatprep.mubr.f32.mxu1 %v6706_v38  ;;  %v4020_v1 = vld [vmem:[%s7171_s1 + $0x3f8] sm:$0xff] }
  0xaa   : > { %5035 = vmatprep.mubr.f32.mxu0 %v6295_v5  ;;  %5471 = vmatpush3.bf16.msra.mxu0 %v5468_v49  ;;  %v6734_v5 = vld [vmem:[%s6027_s24 + $0x159] sm:$0xff]  ;;  %v5480_v49 = vpack.c.bf16 %v4020_v1, %v4019_v56  ;;  %v3818_v56 = vld [vmem:[%s7171_s1 + $0x1a8] sm:$0xff] }
  0xab   : > { %5473 = vmatprep.subr.bf16.mxu0 %v5472_v45  ;;  %v3820_v1 = vld [vmem:[%s7171_s1 + $0x1b8] sm:$0xff] }
  0xac   : > { %4660 = vmatmul.mubr.f32.gmra.mrb[26].mxu1 %v6718_v57 }
  0xad   : > { %5036 = vmatmul.mubr.f32.gmra.mrb[10].mxu0 %v6310_v18  ;;  %4662 = vmatprep.mubr.f32.mxu1 %v6722_v22  ;;  %v4054_v18 = vld [vmem:[%s7171_s1 + $0x408] sm:$0xff] }
  0xae   : > { %5038 = vmatprep.mubr.f32.mxu0 %v6323_v26  ;;  %5475 = vmatpush3.bf16.msra.mxu0 %v5472_v45  ;;  %v6750_v26 = vld [vmem:[%s6027_s24 + $0x171] sm:$0xff]  ;;  %v6754_v45 = vpack.c.bf16 %v4054_v18, %v4053_v4 }
  0xaf   : > { %5477 = vmatprep.subr.bf16.mxu0 %v5476_v23  ;;  %v7222_v4 = vld [vmem:[#allocation16_spill] sm:$0xff]  ;;  %v7223_v18 = vld [vmem:[#allocation17_spill] sm:$0xff] }
  0xb0   : > { %4663 = vmatmul.mubr.f32.gmra.mrb[28].mxu1 %v6734_v5 }
  0xb1   : > { %5039 = vmatmul.mubr.f32.gmra.mrb[12].mxu0 %v6340_v39  ;;  %4665 = vmatprep.mubr.f32.mxu1 %v6738_v28  ;;  %v3816_v39 = vld [vmem:[%s7171_s1 + $0x198] sm:$0xff] }
  0xb2   : > { %5041 = vmatprep.mubr.f32.mxu0 %v6347_v42  ;;  %5479 = vmatpush3.bf16.msra.mxu0 %v5476_v23  ;;  %v5328_v42 = vpack.c.bf16 %v3816_v39, %v3815_v16  ;;  %v3817_v23 = vld [vmem:[%s7171_s1 + $0x1a0] sm:$0xff]  ;;  %v3973_v16 = vld [vmem:[%s6027_s24 + $0x31] sm:$0xff] }
  0xb3   : > { %5481 = vmatprep.subr.bf16.mxu0 %v5480_v49  ;;  %v7224_v39 = vld [vmem:[#allocation18_spill] sm:$0xff] }
  0xb4   : > { %4666 = vmatmul.mubr.f32.gmra.mrb[30].mxu1 %v6750_v26 }
  0xb5   : > { %5042 = vmatmul.mubr.f32.gmra.mrb[14].mxu0 %v6363_v52  ;;  %4700 = vmatprep.mubr.f32.mxu1 %v940_v41  ;;  %v5332_v52 = vpack.c.bf16 %v3818_v56, %v3817_v23  ;;  %v3956_v41 = vld [vmem:[%s6027_s24 + $0x1a0] sm:$0xff]  ;;  %v7225_v23 = vld [vmem:[#allocation20_spill] sm:$0xff] }
  0xb6   : > { %5044 = vmatprep.mubr.f32.mxu0 %v6370_v55  ;;  %5483 = vmatpush3.bf16.msra.mxu0 %v5480_v49  ;;  %v3819_v55 = vld [vmem:[%s7171_s1 + $0x1b0] sm:$0xff]  ;;  %v3974_v56 = vld [vmem:[%s6027_s24 + $0x39] sm:$0xff] }
  0xb7   : > { %5485 = vmatprep.subr.bf16.mxu0 %v6754_v45 }
  0xb8   : > { %4701 = vmatmul.mubr.f32.vlgmr.msra.gmra.mrb[0].mxu1 %v941_v53  ;;  %v4055_v53 = vld [vmem:[%s7171_s1 + $0x410] sm:$0xff] }
  0xb9   : > { %5045 = vmatmul.mubr.f32.gmra.mrb[16].mxu0 %v6385_v2  ;;  %5327 = vmatpush3.bf16.msra.mxu1 %v6628_v10  ;;  %v3822_v2 = vld [vmem:[%s7171_s1 + $0x1c8] sm:$0xff]  ;;  %v3955_v10 = vld [vmem:[%s6027_s24 + $0x198] sm:$0xff] }
  0xba   : > { %4703 = vmatprep.mubr.f32.mxu1 %v6326_v27  ;;  %5047 = vmatprep.mubr.f32.mxu0 %v6392_v11  ;;  %v5336_v27 = vpack.c.bf16 %v3820_v1, %v3819_v55  ;;  %v3824_v11 = vld [vmem:[%s7171_s1 + $0x1d8] sm:$0xff]  ;;  %v7226_v1 = vld [vmem:[#allocation6_spill] sm:$0xff] }
  0xbb   : > { %5329 = vmatprep.subr.bf16.mxu1 %v5328_v42 }
  0xbc   : > { %4704 = vmatmul.mubr.f32.gmra.mrb[2].mxu1 %v6344_v40  ;;  %v3821_v40 = vld [vmem:[%s7171_s1 + $0x1c0] sm:$0xff] }
  0xbd   : > { %5048 = vmatmul.mubr.f32.gmra.mrb[18].mxu0 %v6407_v24  ;;  %4706 = vmatprep.mubr.f32.mxu1 %v6350_v44  ;;  %v5340_v44 = vpack.c.bf16 %v3822_v2, %v3821_v40  ;;  %v3826_v24 = vld [vmem:[%s7171_s1 + $0x1e8] sm:$0xff]  ;;  %v3976_v2 = vld [vmem:[%s6027_s24 + $0x51] sm:$0xff] }
  0xbe   : > { %5050 = vmatprep.mubr.f32.mxu0 %v6414_v32  ;;  %5331 = vmatpush3.bf16.msra.mxu1 %v5328_v42  ;;  %v6818_v32 = vld [vmem:[%s6027_s24 + $0x180] sm:$0xff]  ;;  %v4056_v42 = vld [vmem:[%s7171_s1 + $0x418] sm:$0xff]  ;;  %v4058_v40 = vld [vmem:[%s7171_s1 + $0x428] sm:$0xff] }
  0xbf   : > { %5333 = vmatprep.subr.bf16.mxu1 %v5332_v52  ;;  %v5488_v55 = vpack.c.bf16 %v4056_v42, %v4055_v53  ;;  %v7231_v53 = vld [vmem:[#allocation10_spill] sm:$0xff]  ;;  %v3792_v42 = vld [vmem:[%s6027_s24 + $0x98] sm:$0xff] }
  0xc0   : > { %4707 = vmatmul.mubr.f32.gmra.mrb[4].mxu1 %v6367_v54  ;;  %v3823_v54 = vld [vmem:[%s7171_s1 + $0x1d0] sm:$0xff] }
  0xc1   : > { %5051 = vmatmul.mubr.f32.gmra.mrb[20].mxu0 %v6429_v60  ;;  %4709 = vmatprep.mubr.f32.mxu1 %v6373_v59  ;;  %v5344_v59 = vpack.c.bf16 %v3824_v11, %v3823_v54  ;;  %v7219_v60 = vld [vmem:[#allocation14_spill] sm:$0xff]  ;;  %v4059_v54 = vld [vmem:[%s7171_s1 + $0x430] sm:$0xff]  ;;  %v4060_v11 = vld [vmem:[%s7171_s1 + $0x438] sm:$0xff] }
  0xc2   : > { %5053 = vmatprep.mubr.f32.mxu0 %v6436_v63  ;;  %5335 = vmatpush3.bf16.msra.mxu1 %v5332_v52  ;;  %v3827_v63 = vld [vmem:[%s7171_s1 + $0x1f0] sm:$0xff] }
  0xc3   : > { %5337 = vmatprep.subr.bf16.mxu1 %v5336_v27  ;;  %v3975_v52 = vld [vmem:[%s6027_s24 + $0x49] sm:$0xff] }
  0xc4   : > { %4710 = vmatmul.mubr.f32.gmra.mrb[6].mxu1 %v6389_v3  ;;  %v3825_v3 = vld [vmem:[%s7171_s1 + $0x1e0] sm:$0xff] }
  0xc5   : > { %5054 = vmatmul.mubr.f32.gmra.mrb[22].mxu0 %v6451_v14  ;;  %4712 = vmatprep.mubr.f32.mxu1 %v6395_v13  ;;  %v7218_v13 = vld [vmem:[#allocation19_spill] sm:$0xff]  ;;  %v3828_v14 = vld [vmem:[%s7171_s1 + $0x1f8] sm:$0xff] }
  0xc6   : > { %5056 = vmatprep.mubr.f32.mxu0 %v6458_v51  ;;  %5339 = vmatpush3.bf16.msra.mxu1 %v5336_v27  ;;  %v7221_v51 = vld [vmem:[#allocation15_spill] sm:$0xff]  ;;  %v5352_v49 = vpack.c.bf16 %v3828_v14, %v3827_v63  ;;  %v4057_v27 = vld [vmem:[%s7171_s1 + $0x420] sm:$0xff]  ;;  %v4068_v14 = vld [vmem:[%s7171_s1 + $0x478] sm:$0xff] }
  0xc7   : > { %5341 = vmatprep.subr.bf16.mxu1 %v5340_v44  ;;  %v4066_v63 = vld [vmem:[%s7171_s1 + $0x468] sm:$0xff] }
  0xc8   : > { %4713 = vmatmul.mubr.f32.gmra.mrb[8].mxu1 %v6411_v30  ;;  %v5348_v30 = vpack.c.bf16 %v3826_v24, %v3825_v3  ;;  %v4062_v3 = vld [vmem:[%s7171_s1 + $0x448] sm:$0xff] }
  0xc9   : > { %5057 = vmatmul.mubr.f32.gmra.mrb[24].mxu0 %v6473_v48  ;;  %4715 = vmatprep.mubr.f32.mxu1 %v6417_v36  ;;  %v7220_v36 = vld [vmem:[#allocation21_spill] sm:$0xff]  ;;  %v6831_v48 = vld [vmem:[%s6027_s24 + $0x188] sm:$0xff] }
  0xca   : > { %5059 = vmatprep.mubr.f32.mxu0 %v7218_v13  ;;  %5343 = vmatpush3.bf16.msra.mxu1 %v5340_v44  ;;  %v3977_v44 = vld [vmem:[%s6027_s24 + $0x61] sm:$0xff]  ;;  %v4064_v13 = vld [vmem:[%s7171_s1 + $0x458] sm:$0xff] }
  0xcb   : > { %5345 = vmatprep.subr.bf16.mxu1 %v5344_v59 }
  0xcc   : > { %4716 = vmatmul.mubr.f32.gmra.mrb[10].mxu1 %v7219_v60 }
  0xcd   : > { %5060 = vmatmul.mubr.f32.gmra.mrb[26].mxu0 %v7220_v36  ;;  %4718 = vmatprep.mubr.f32.mxu1 %v7221_v51  ;;  %v7227_v36 = vld [vmem:[#allocation22_spill] sm:$0xff]  ;;  %v3786_v51 = vld [vmem:[%s6027_s24 + $0x50] sm:$0xff] }
  0xce   : > { %5062 = vmatprep.mubr.f32.mxu0 %v6818_v32  ;;  %5347 = vmatpush3.bf16.msra.mxu1 %v5344_v59  ;;  %v5496_v59 = vpack.c.bf16 %v4060_v11, %v4059_v54  ;;  %v3797_v54 = vld [vmem:[%s6027_s24 + $0xd8] sm:$0xff] }
  0xcf   : > { %5349 = vmatprep.subr.bf16.mxu1 %v5348_v30  ;;  %v4021_v11 = vld [vmem:[%s6027_s24 + $0x32] sm:$0xff] }
  0xd0   : > { %4719 = vmatmul.mubr.f32.gmra.mrb[12].mxu1 %v7222_v4  ;;  %v3788_v4 = vld [vmem:[%s6027_s24 + $0x68] sm:$0xff] }
  0xd1   : > { %5063 = vmatmul.mubr.f32.gmra.mrb[28].mxu0 %v6831_v48  ;;  %4721 = vmatprep.mubr.f32.mxu1 %v7223_v18  ;;  %v3789_v18 = vld [vmem:[%s6027_s24 + $0x78] sm:$0xff] }
  0xd2   : > { %5065 = vmatprep.mubr.f32.mxu0 %v3955_v10  ;;  %5351 = vmatpush3.bf16.msra.mxu1 %v5348_v30  ;;  %v3983_v30 = vld [vmem:[%s6027_s24 + $0xa9] sm:$0xff]  ;;  %v3787_v10 = vld [vmem:[%s6027_s24 + $0x60] sm:$0xff] }
  0xd3   : > { %5353 = vmatprep.subr.bf16.mxu1 %v5352_v49 }
  0xd4   : > { %4722 = vmatmul.mubr.f32.gmra.mrb[14].mxu1 %v7224_v39  ;;  %v3791_v39 = vld [vmem:[%s6027_s24 + $0x90] sm:$0xff] }
  0xd5   : > { %5066 = vmatmul.mubr.f32.gmra.mrb[30].mxu0 %v3956_v41  ;;  %4724 = vmatprep.mubr.f32.mxu1 %v7225_v23  ;;  %v7230_v41 = vld [vmem:[#allocation9_spill] sm:$0xff]  ;;  %v3793_v23 = vld [vmem:[%s6027_s24 + $0xa8] sm:$0xff] }
  0xd6   : > { %5100 = vmatprep.mubr.f32.mxu0 %v3973_v16  ;;  %5355 = vmatpush3.bf16.msra.mxu1 %v5352_v49  ;;  %v7229_v49 = vld [vmem:[#allocation8_spill] sm:$0xff]  ;;  %v3790_v16 = vld [vmem:[%s6027_s24 + $0x80] sm:$0xff] }
  0xd7   : > { %5516 = vmatprep.subr.bf16.mxu1 %v7226_v1 }
  0xd8   : > { %4725 = vmatmul.mubr.f32.gmra.mrb[16].mxu1 %v6499_v17  ;;  %v5492_v17 = vpack.c.bf16 %v4058_v40, %v4057_v27  ;;  %v3795_v27 = vld [vmem:[%s6027_s24 + $0xc0] sm:$0xff] }
  0xd9   : > { %5101 = vmatmul.mubr.f32.vlgmr.msra.gmra.mrb[0].mxu0 %v3974_v56  ;;  %4727 = vmatprep.mubr.f32.mxu1 %v6503_v15  ;;  %v3978_v15 = vld [vmem:[%s6027_s24 + $0x69] sm:$0xff]  ;;  %v6949_v56 = vld [vmem:[%s6027_s24 + $0x181] sm:$0xff]  ;;  %v4003_v40 = vld [vmem:[%s6027_s24 + $0x199] sm:$0xff] }
  0xda   : > { %5487 = vmatpush3.bf16.msra.mxu0 %v6754_v45  ;;  %5103 = vmatprep.mubr.f32.mxu0 %v3975_v52  ;;  %v3979_v45 = vld [vmem:[%s6027_s24 + $0x79] sm:$0xff]  ;;  %v7232_v52 = vld [vmem:[#allocation11_spill] sm:$0xff] }
  0xdb   : > { %5489 = vmatprep.subr.bf16.mxu0 %v5488_v55 }
  0xdc   : > { %4728 = vmatmul.mubr.f32.gmra.mrb[18].mxu1 %v6518_v37  ;;  %v4061_v37 = vld [vmem:[%s7171_s1 + $0x440] sm:$0xff] }
  0xdd   : > { %5104 = vmatmul.mubr.f32.gmra.mrb[2].mxu0 %v3976_v2  ;;  %4730 = vmatprep.mubr.f32.mxu1 %v6521_v50  ;;  %v3980_v50 = vld [vmem:[%s6027_s24 + $0x81] sm:$0xff]  ;;  %v5500_v24 = vpack.c.bf16 %v4062_v3, %v4061_v37  ;;  %v7233_v2 = vld [vmem:[#allocation12_spill] sm:$0xff] }
  0xde   : > { %5106 = vmatprep.mubr.f32.mxu0 %v3977_v44  ;;  %5491 = vmatpush3.bf16.msra.mxu0 %v5488_v55  ;;  %v3794_v55 = vld [vmem:[%s6027_s24 + $0xb0] sm:$0xff]  ;;  %v3796_v44 = vld [vmem:[%s6027_s24 + $0xc8] sm:$0xff] }
  0xdf   : > { %5493 = vmatprep.subr.bf16.mxu0 %v5492_v17  ;;  %v3799_v37 = vld [vmem:[%s6027_s24 + $0xf0] sm:$0xff] }
  0xe0   : > { %4731 = vmatmul.mubr.f32.gmra.mrb[20].mxu1 %v6535_v7  ;;  %v4063_v7 = vld [vmem:[%s7171_s1 + $0x450] sm:$0xff] }
  0xe1   : > { %5107 = vmatmul.mubr.f32.gmra.mrb[4].mxu0 %v3978_v15  ;;  %4733 = vmatprep.mubr.f32.mxu1 %v6538_v12  ;;  %v3982_v12 = vld [vmem:[%s6027_s24 + $0x99] sm:$0xff]  ;;  %v5504_v60 = vpack.c.bf16 %v4064_v13, %v4063_v7  ;;  %v4023_v3 = vld [vmem:[%s6027_s24 + $0x4a] sm:$0xff]  ;;  %v4025_v13 = vld [vmem:[%s6027_s24 + $0x62] sm:$0xff] }
  0xe2   : > { %5109 = vmatprep.mubr.f32.mxu0 %v3979_v45  ;;  %5495 = vmatpush3.bf16.msra.mxu0 %v5492_v17  ;;  %v4004_v17 = vld [vmem:[%s6027_s24 + $0x1a1] sm:$0xff]  ;;  %v7234_v15 = vld [vmem:[#allocation13_spill] sm:$0xff] }
  0xe3   : > { %5497 = vmatprep.subr.bf16.mxu0 %v5496_v59  ;;  %v3798_v45 = vld [vmem:[%s6027_s24 + $0xe0] sm:$0xff]  ;;  %v3801_v7 = vld [vmem:[%s6027_s24 + $0x108] sm:$0xff] }
  0xe4   : > { %4734 = vmatmul.mubr.f32.gmra.mrb[22].mxu1 %v6551_v29  ;;  %v4065_v29 = vld [vmem:[%s7171_s1 + $0x460] sm:$0xff] }
  0xe5   : > { %5110 = vmatmul.mubr.f32.gmra.mrb[6].mxu0 %v3980_v50  ;;  %4736 = vmatprep.mubr.f32.mxu1 %v6554_v61  ;;  %v5508_v61 = vpack.c.bf16 %v4066_v63, %v4065_v29  ;;  %v3800_v50 = vld [vmem:[%s6027_s24 + $0xf8] sm:$0xff]  ;;  %v3804_v63 = vld [vmem:[%s6027_s24 + $0x128] sm:$0xff] }
  0xe6   : > { %5112 = vmatprep.mubr.f32.mxu0 %v6242_v47  ;;  %5499 = vmatpush3.bf16.msra.mxu0 %v5496_v59  ;;  %v3984_v47 = vld [vmem:[%s6027_s24 + $0xb1] sm:$0xff]  ;;  %v4022_v59 = vld [vmem:[%s6027_s24 + $0x3a] sm:$0xff] }
  0xe7   : > { %5501 = vmatprep.subr.bf16.mxu0 %v5500_v24  ;;  %v4027_v29 = vld [vmem:[%s6027_s24 + $0x7a] sm:$0xff] }
  0xe8   : > { %4737 = vmatmul.mubr.f32.gmra.mrb[24].mxu1 %v6567_v19  ;;  %v4067_v19 = vld [vmem:[%s7171_s1 + $0x470] sm:$0xff] }
  0xe9   : > { %5113 = vmatmul.mubr.f32.gmra.mrb[8].mxu0 %v3982_v12  ;;  %4739 = vmatprep.mubr.f32.mxu1 %v6570_v8  ;;  %v5512_v8 = vpack.c.bf16 %v4068_v14, %v4067_v19  ;;  %v3802_v12 = vld [vmem:[%s6027_s24 + $0x110] sm:$0xff]  ;;  %v3806_v14 = vld [vmem:[%s6027_s24 + $0x140] sm:$0xff] }
  0xea   : > { %5115 = vmatprep.mubr.f32.mxu0 %v3983_v30  ;;  %5503 = vmatpush3.bf16.msra.mxu0 %v5500_v24  ;;  %v4024_v24 = vld [vmem:[%s6027_s24 + $0x52] sm:$0xff]  ;;  %v4026_v30 = vld [vmem:[%s6027_s24 + $0x6a] sm:$0xff] }
  0xeb   : > { %5505 = vmatprep.subr.bf16.mxu0 %v5504_v60  ;;  %v4029_v19 = vld [vmem:[%s6027_s24 + $0x92] sm:$0xff] }
  0xec   : > { %4740 = vmatmul.mubr.f32.gmra.mrb[26].mxu1 %v6583_v43  ;;  %v3781_v43 = vld [vmem:[%s6027_s24 + $0x18] sm:$0xff] }
  0xed   : > { %5116 = vmatmul.mubr.f32.gmra.mrb[10].mxu0 %v3984_v47  ;;  %4742 = vmatprep.mubr.f32.mxu1 %v6586_v20  ;;  %v3784_v20 = vld [vmem:[%s6027_s24 + $0x38] sm:$0xff]  ;;  %v4028_v47 = vld [vmem:[%s6027_s24 + $0x82] sm:$0xff] }
  0xee   : > { %5118 = vmatprep.mubr.f32.mxu0 %v6298_v6  ;;  %5507 = vmatpush3.bf16.msra.mxu0 %v5504_v60  ;;  %v3782_v6 = vld [vmem:[%s6027_s24 + $0x20] sm:$0xff] }
  0xef   : > { %5509 = vmatprep.subr.bf16.mxu0 %v5508_v61  ;;  %v3803_v60 = vld [vmem:[%s6027_s24 + $0x120] sm:$0xff] }
  0xf0   : > { %4743 = vmatmul.mubr.f32.gmra.mrb[28].mxu1 %v7227_v36  ;;  %v3807_v36 = vld [vmem:[%s6027_s24 + $0x150] sm:$0xff] }
  0xf1   : > { %5119 = vmatmul.mubr.f32.gmra.mrb[12].mxu0 %v6320_v25  ;;  %4745 = vmatprep.mubr.f32.mxu1 %v6602_v33  ;;  %v3783_v25 = vld [vmem:[%s6027_s24 + $0x30] sm:$0xff]  ;;  %v3785_v33 = vld [vmem:[%s6027_s24 + $0x48] sm:$0xff] }
  0xf2   : > { %5121 = vmatprep.mubr.f32.mxu0 %v6640_v58  ;;  %5511 = vmatpush3.bf16.msra.mxu0 %v5508_v61  ;;  %v3805_v61 = vld [vmem:[%s6027_s24 + $0x138] sm:$0xff] }
  0xf3   : > { %5513 = vmatprep.subr.bf16.mxu0 %v5512_v8 }
  0xf4   : > { %4746 = vmatmul.mubr.f32.gmra.mrb[30].mxu1 %v6615_v31  ;;  %v7228_v31 = vld [vmem:[#allocation7_spill] sm:$0xff] }
  0xf5   : > { %5122 = vmatmul.mubr.f32.gmra.mrb[14].mxu0 %v6653_v9  ;;  %4780 = vmatprep.mubr.f32.mxu1 %v3781_v43  ;;  %v4031_v43 = vld [vmem:[%s6027_s24 + $0xaa] sm:$0xff] }
  0xf6   : > { %5124 = vmatprep.mubr.f32.mxu0 %v6658_v0  ;;  %5515 = vmatpush3.bf16.msra.mxu0 %v5512_v8  ;;  %v4030_v8 = vld [vmem:[%s6027_s24 + $0x9a] sm:$0xff] }
  0xf8   : > { %4781 = vmatmul.mubr.f32.vlgmr.msra.gmra.mrb[0].mxu1 %v3782_v6  ;;  %v3808_v6 = vld [vmem:[%s6027_s24 + $0x158] sm:$0xff] }
  0xf9   : > { %5125 = vmatmul.mubr.f32.gmra.mrb[16].mxu0 %v6670_v21  ;;  %5524 = vmatpush3.bf16.msra.mxu1 %v7226_v1  ;;  %v6956_v1 = vld [vmem:[%s6027_s24 + $0x189] sm:$0xff] }
  0xfa   : > { %4783 = vmatprep.mubr.f32.mxu1 %v3783_v25  ;;  %5127 = vmatprep.mubr.f32.mxu0 %v6674_v62  ;;  %v4032_v25 = vld [vmem:[%s6027_s24 + $0xb2] sm:$0xff] }
  0xfb   : > { %5517 = vmatprep.subr.bf16.mxu1 %v7228_v31 }
  0xfc   : > { %4784 = vmatmul.mubr.f32.gmra.mrb[2].mxu1 %v3784_v20  ;;  %v3809_v20 = vld [vmem:[%s6027_s24 + $0x168] sm:$0xff] }
  0xfd   : > { %5128 = vmatmul.mubr.f32.gmra.mrb[18].mxu0 %v6686_v34  ;;  %4786 = vmatprep.mubr.f32.mxu1 %v3785_v33  ;;  %v4033_v33 = vld [vmem:[%s6027_s24 + $0xc2] sm:$0xff] }
  0xfe   : > { %5130 = vmatprep.mubr.f32.mxu0 %v6690_v35  ;;  %5525 = vmatpush3.bf16.msra.mxu1 %v7228_v31  ;;  %v3810_v31 = vld [vmem:[%s6027_s24 + $0x170] sm:$0xff] }
  0xff   : > { %5518 = vmatprep.subr.bf16.mxu1 %v7229_v49 }
 0x100   : > { %4787 = vmatmul.mubr.f32.gmra.mrb[4].mxu1 %v3786_v51  ;;  %v4034_v51 = vld [vmem:[%s6027_s24 + $0xca] sm:$0xff] }
 0x101   : > { %5131 = vmatmul.mubr.f32.gmra.mrb[20].mxu0 %v6702_v46  ;;  %4789 = vmatprep.mubr.f32.mxu1 %v3787_v10  ;;  %v4035_v10 = vld [vmem:[%s6027_s24 + $0xda] sm:$0xff] }
 0x102   : > { %5133 = vmatprep.mubr.f32.mxu0 %v6706_v38  ;;  %5526 = vmatpush3.bf16.msra.mxu1 %v7229_v49  ;;  %v4036_v49 = vld [vmem:[%s6027_s24 + $0xe2] sm:$0xff] }
 0x103   : > { %5519 = vmatprep.subr.bf16.mxu1 %v7230_v41 }
 0x104   : > { %4790 = vmatmul.mubr.f32.gmra.mrb[6].mxu1 %v3788_v4  ;;  %v4037_v4 = vld [vmem:[%s6027_s24 + $0xf2] sm:$0xff] }
 0x105   : > { %5134 = vmatmul.mubr.f32.gmra.mrb[22].mxu0 %v6718_v57  ;;  %4792 = vmatprep.mubr.f32.mxu1 %v3789_v18  ;;  %v4038_v18 = vld [vmem:[%s6027_s24 + $0xfa] sm:$0xff] }
 0x106   : > { %5136 = vmatprep.mubr.f32.mxu0 %v6722_v22  ;;  %5527 = vmatpush3.bf16.msra.mxu1 %v7230_v41  ;;  %v4039_v41 = vld [vmem:[%s6027_s24 + $0x10a] sm:$0xff] }
 0x107   : > { %5520 = vmatprep.subr.bf16.mxu1 %v7231_v53 }
 0x108   : > { %4793 = vmatmul.mubr.f32.gmra.mrb[8].mxu1 %v3790_v16  ;;  %v4041_v16 = vld [vmem:[%s6027_s24 + $0x122] sm:$0xff] }
 0x109   : > { %5137 = vmatmul.mubr.f32.gmra.mrb[24].mxu0 %v6734_v5  ;;  %4795 = vmatprep.mubr.f32.mxu1 %v3791_v39 }
 0x10a   : > { %5139 = vmatprep.mubr.f32.mxu0 %v6738_v28  ;;  %5528 = vmatpush3.bf16.msra.mxu1 %v7231_v53 }
 0x10b   : > { %5521 = vmatprep.subr.bf16.mxu1 %v7232_v52 }
 0x10c   : > { %4796 = vmatmul.mubr.f32.gmra.mrb[10].mxu1 %v3792_v42 }
 0x10d   : > { %5140 = vmatmul.mubr.f32.gmra.mrb[26].mxu0 %v6750_v26  ;;  %4798 = vmatprep.mubr.f32.mxu1 %v3793_v23 }
 0x10e   : > { %5142 = vmatprep.mubr.f32.mxu0 %v6949_v56  ;;  %5529 = vmatpush3.bf16.msra.mxu1 %v7232_v52 }
 0x10f   : > { %5522 = vmatprep.subr.bf16.mxu1 %v7233_v2 }
 0x110   : > { %4799 = vmatmul.mubr.f32.gmra.mrb[12].mxu1 %v3794_v55 }
 0x111   : > { %5143 = vmatmul.mubr.f32.gmra.mrb[28].mxu0 %v6956_v1  ;;  %4801 = vmatprep.mubr.f32.mxu1 %v3795_v27 }
 0x112   : > { %5145 = vmatprep.mubr.f32.mxu0 %v4003_v40  ;;  %5530 = vmatpush3.bf16.msra.mxu1 %v7233_v2 }
 0x113   : > { %5523 = vmatprep.subr.bf16.mxu1 %v7234_v15 }
 0x114   : > { %4802 = vmatmul.mubr.f32.gmra.mrb[14].mxu1 %v3796_v44 }
 0x115   : > { %5146 = vmatmul.mubr.f32.gmra.mrb[30].mxu0 %v4004_v17  ;;  %4804 = vmatprep.mubr.f32.mxu1 %v3797_v54  ;;  %v7044_v54 = vld [vmem:[%s7172_s2] ss:$0 sm:$0xff] }
 0x116   : > { %5180 = vmatprep.mubr.f32.mxu0 %v4021_v11  ;;  %5531 = vmatpush3.bf16.msra.mxu1 %v7234_v15 }
 0x118   : > { %4805 = vmatmul.mubr.f32.gmra.mrb[16].mxu1 %v3798_v45 }
 0x119   : > { %5181 = vmatmul.mubr.f32.vlgmr.msra.gmra.mrb[0].mxu0 %v4022_v59  ;;  %4807 = vmatprep.mubr.f32.mxu1 %v3799_v37 }
 0x11a   : > { %5183 = vmatprep.mubr.f32.mxu0 %v4023_v3 }
 0x11c   : > { %4808 = vmatmul.mubr.f32.gmra.mrb[18].mxu1 %v3800_v50 }
 0x11d   : > { %5184 = vmatmul.mubr.f32.gmra.mrb[2].mxu0 %v4024_v24  ;;  %4810 = vmatprep.mubr.f32.mxu1 %v3801_v7 }
 0x11e   : > { %5186 = vmatprep.mubr.f32.mxu0 %v4025_v13 }
 0x120   : > { %4811 = vmatmul.mubr.f32.gmra.mrb[20].mxu1 %v3802_v12 }
 0x121   : > { %5187 = vmatmul.mubr.f32.gmra.mrb[4].mxu0 %v4026_v30  ;;  %4813 = vmatprep.mubr.f32.mxu1 %v3803_v60 }
 0x122   : > { %5189 = vmatprep.mubr.f32.mxu0 %v4027_v29 }
 0x124   : > { %4814 = vmatmul.mubr.f32.gmra.mrb[22].mxu1 %v3804_v63 }
 0x125   : > { %5190 = vmatmul.mubr.f32.gmra.mrb[6].mxu0 %v4028_v47  ;;  %4816 = vmatprep.mubr.f32.mxu1 %v3805_v61 }
 0x126   : > { %5192 = vmatprep.mubr.f32.mxu0 %v4029_v19 }
 0x128   : > { %4817 = vmatmul.mubr.f32.gmra.mrb[24].mxu1 %v3806_v14 }
 0x129   : > { %5193 = vmatmul.mubr.f32.gmra.mrb[8].mxu0 %v4030_v8  ;;  %4819 = vmatprep.mubr.f32.mxu1 %v3807_v36 }
 0x12a   : > { %5195 = vmatprep.mubr.f32.mxu0 %v4031_v43 }
 0x12c   : > { %4820 = vmatmul.mubr.f32.gmra.mrb[26].mxu1 %v3808_v6 }
 0x12d   : > { %5196 = vmatmul.mubr.f32.gmra.mrb[10].mxu0 %v4032_v25  ;;  %4822 = vmatprep.mubr.f32.mxu1 %v3809_v20 }
 0x12e   : > { %5198 = vmatprep.mubr.f32.mxu0 %v4033_v33 }
 0x130   : > { %4823 = vmatmul.mubr.f32.gmra.mrb[28].mxu1 %v3810_v31 }
 0x131   : > { %5199 = vmatmul.mubr.f32.gmra.mrb[12].mxu0 %v4034_v51  ;;  %4825 = vmatprep.mubr.f32.mxu1 %v6818_v32  ;;  %v4040_v32 = vld [vmem:[%s6027_s24 + $0x112] sm:$0xff] }
 0x132   : > { %5201 = vmatprep.mubr.f32.mxu0 %v4035_v10 }
 0x134   : > { %4826 = vmatmul.mubr.f32.gmra.mrb[30].mxu1 %v6831_v48  ;;  %v4043_v48 = vld [vmem:[%s6027_s24 + $0x13a] sm:$0xff] }
 0x135   : > { %5202 = vmatmul.mubr.f32.gmra.mrb[14].mxu0 %v4036_v49  ;;  %4884 = vmatprep.mubr.f32.mxu1 %v6640_v58  ;;  %v4042_v58 = vld [vmem:[%s6027_s24 + $0x12a] sm:$0xff] }
 0x136   : > { %5204 = vmatprep.mubr.f32.mxu0 %v4037_v4 }
 0x138   : > { %4885 = vmatmul.mubr.f32.vlgmr.msra.gmra.mrb[16].mxu1 %v6653_v9  ;;  %v4044_v9 = vld [vmem:[%s6027_s24 + $0x142] sm:$0xff] }
 0x139   : > { %5205 = vmatmul.mubr.f32.gmra.mrb[16].mxu0 %v4038_v18  ;;  %4887 = vmatprep.mubr.f32.mxu1 %v6658_v0  ;;  %v4045_v0 = vld [vmem:[%s6027_s24 + $0x152] sm:$0xff] }
 0x13a   : > { %5207 = vmatprep.mubr.f32.mxu0 %v4039_v41 }
 0x13c   : > { %4888 = vmatmul.mubr.f32.gmra.mrb[18].mxu1 %v6670_v21  ;;  %v4046_v21 = vld [vmem:[%s6027_s24 + $0x15a] sm:$0xff] }
 0x13d   : > { %5208 = vmatmul.mubr.f32.gmra.mrb[18].mxu0 %v4040_v32  ;;  %4890 = vmatprep.mubr.f32.mxu1 %v6674_v62  ;;  %v4047_v62 = vld [vmem:[%s6027_s24 + $0x16a] sm:$0xff] }
 0x13e   : > { %5210 = vmatprep.mubr.f32.mxu0 %v4041_v16 }
 0x140   : > { %4891 = vmatmul.mubr.f32.gmra.mrb[20].mxu1 %v6686_v34  ;;  %v4048_v34 = vld [vmem:[%s6027_s24 + $0x172] sm:$0xff] }
 0x141   : > { %5211 = vmatmul.mubr.f32.gmra.mrb[20].mxu0 %v4042_v58  ;;  %4893 = vmatprep.mubr.f32.mxu1 %v6690_v35  ;;  %v4049_v35 = vld [vmem:[%s6027_s24 + $0x182] sm:$0xff] }
 0x142   : > { %5213 = vmatprep.mubr.f32.mxu0 %v4043_v48 }
 0x144   : > { %4894 = vmatmul.mubr.f32.gmra.mrb[22].mxu1 %v6702_v46  ;;  %v4050_v46 = vld [vmem:[%s6027_s24 + $0x18a] sm:$0xff] }
 0x145   : > { %5214 = vmatmul.mubr.f32.gmra.mrb[22].mxu0 %v4044_v9  ;;  %4896 = vmatprep.mubr.f32.mxu1 %v6706_v38  ;;  %v4051_v38 = vld [vmem:[%s6027_s24 + $0x19a] sm:$0xff] }
 0x146   : > { %5216 = vmatprep.mubr.f32.mxu0 %v4045_v0 }
 0x148   : > { %4897 = vmatmul.mubr.f32.gmra.mrb[24].mxu1 %v6718_v57  ;;  %v4052_v57 = vld [vmem:[%s6027_s24 + $0x1a2] sm:$0xff]  ;;  %s161_s24 = sand.u32 1, %s5884_s13  }
 0x149   : > { %5217 = vmatmul.mubr.f32.gmra.mrb[24].mxu0 %v4046_v21  ;;  %4899 = vmatprep.mubr.f32.mxu1 %v6722_v22  ;;  %s3747_s28 = sshll.u32 %s161_s24, 8  ;;  %s7129_s16 = scalar_lea.sflag [#allocation4], %s161_s24 }
 0x14a   : > { %5219 = vmatprep.mubr.f32.mxu0 %v4047_v62  ;;  %s7050_s29 = scalar_lea.vmem [#allocation3], %s3747_s28 }
 0x14b   : > { %s3681_s4 = sshll.u32 %s7050_s29, 4  ;;  %s7123_s4 = int_to_ptr.vmem [resolvable:$true] %s3681_s4 }
 0x14c   : > { %4900 = vmatmul.mubr.f32.gmra.mrb[26].mxu1 %v6734_v5  ;;  %s5830_s8 = scalar_lea.vmem %s7123_s4, 4096  ;;  %p5837_p0 = scmp.lt.s32.totalorder %s7123_s4, %s5835_s10 }
 0x14d   : > { %5220 = vmatmul.mubr.f32.gmra.mrb[26].mxu0 %v4048_v34  ;;  %4902 = vmatprep.mubr.f32.mxu1 %v6738_v28  ;;  %p5831_p11 = scmp.ne.s32.totalorder %s7123_s4, %s5830_s8  ;;  %p5838_p1 = scmp.lt.s32.totalorder %s5836_s11, %s5830_s8 }
 0x14e   : > { %5222 = vmatprep.mubr.f32.mxu0 %v4049_v35 }
 0x14f   : > { %p5832_p12 = pnand %p5831_p11, %p5955_p5  ;;  %p5839_p2 = por %p5838_p1, %p5837_p0 }
 0x150   : > { %4903 = vmatmul.mubr.f32.gmra.mrb[28].mxu1 %v6750_v26 }
 0x151   : > { %5223 = vmatmul.mubr.f32.gmra.mrb[28].mxu0 %v4050_v46  ;;  %4905 = vmatprep.mubr.f32.mxu1 %v6949_v56  ;;  %p5833_p13 = pneg %p5832_p12 }
 0x152   : > { %5225 = vmatprep.mubr.f32.mxu0 %v4051_v38 }
 0x153   : > { %p5840_p3 = pnand %p5839_p2, %p5833_p13 }
 0x154   : > { %4906 = vmatmul.mubr.f32.gmra.mrb[30].mxu1 %v6956_v1 }
 0x155   : > { %5226 = vmatmul.mubr.f32.gmra.mrb[30].mxu0 %v4052_v57 }
 0x1cb   : > { %v4782_v22 = vpop.f32.mrb[0].mxu1 }
 0x1cc   : > { %v1458_v39 = vpop.f32.mrb[1].mxu1 }
 0x1cf   : > { %v4785_v5 = vpop.f32.mrb[2].mxu1 }
 0x1d0   : > { %v1468_v53 = vpop.f32.mrb[3].mxu1 }
 0x1d3   : > { %v4788_v28 = vpop.f32.mrb[4].mxu1 }
 0x1d4   : > { %v1478_v42 = vpop.f32.mrb[5].mxu1 }
 0x1d7   : > { %v4791_v23 = vpop.f32.mrb[6].mxu1 }
 0x1d8   : > { %v1488_v52 = vpop.f32.mrb[7].mxu1 }
 0x1db   : > { %v4794_v55 = vpop.f32.mrb[8].mxu1 }
 0x1dc   : > { %v1498_v26 = vpop.f32.mrb[9].mxu1 }
 0x1df   : > { %v4797_v27 = vpop.f32.mrb[10].mxu1 }
 0x1e0   : > { %v1508_v40 = vpop.f32.mrb[11].mxu1 }
 0x1e3   : > { %v7032_v56 = vpop.f32.mrb[12].mxu1 }
 0x1e4   : > { %v7034_v2 = vpop.f32.mrb[13].mxu1 }
 0x1e7   : > { %v7036_v1 = vpop.f32.mrb[14].mxu1 }
 0x1e8   : > { %v7038_v44 = vpop.f32.mrb[15].mxu1 }
 0x1ec   : > { %v5182_v17 = vpop.f32.mrb[0].mxu0 }
 0x1ed   : > { %v5532_v11 = vadd.f32 %v5182_v17, %v4782_v22  ;;  %v3309_v15 = vpop.f32.mrb[1].mxu0 }
 0x1ee   : > { %v5533_v45 = vadd.f32 %v3309_v15, %v1458_v39 }
 0x1ef   : > { %v3572_v59 = vadd.f32 %v5532_v11, %v7044_v54 }
 0x1f0   : > { %v3571_v37 = vadd.f32 %v5533_v45, %v7044_v54  ;;  %v5185_v3 = vpop.f32.mrb[2].mxu0 }
 0x1f1   : > { %v3604_v50 = vmax.f32 %v3572_v59, 0.0  ;;  %v5534_v24 = vadd.f32 %v5185_v3, %v4785_v5  ;;  %v3319_v7 = vpop.f32.mrb[3].mxu0 }
 0x1f2   : > { %v3603_v13 = vmax.f32 %v3571_v37, 0.0  ;;  %v5535_v12 = vadd.f32 %v3319_v7, %v1468_v53 }
 0x1f3   : > { %3636 = vst [vmem:[%s7050_s29 + $0x8] sm:$0xff] %v3604_v50  ;;  %v3574_v30 = vadd.f32 %v5534_v24, %v7044_v54 }
 0x1f4   : > { %3635 = vst [vmem:[%s7050_s29] sm:$0xff] %v3603_v13  ;;  %v3573_v60 = vadd.f32 %v5535_v12, %v7044_v54  ;;  %v5188_v29 = vpop.f32.mrb[4].mxu0 }
 0x1f5   : > { %v3606_v63 = vmax.f32 %v3574_v30, 0.0  ;;  %v5536_v47 = vadd.f32 %v5188_v29, %v4788_v28  ;;  %v3329_v61 = vpop.f32.mrb[5].mxu0 }
 0x1f6   : > { %v3605_v19 = vmax.f32 %v3573_v60, 0.0  ;;  %v5537_v14 = vadd.f32 %v3329_v61, %v1478_v42 }
 0x1f7   : > { %3638 = vst [vmem:[%s7050_s29 + $0x18] sm:$0xff] %v3606_v63  ;;  %v3576_v8 = vadd.f32 %v5536_v47, %v7044_v54 }
 0x1f8   : > { %3637 = vst [vmem:[%s7050_s29 + $0x10] sm:$0xff] %v3605_v19  ;;  %v3575_v36 = vadd.f32 %v5537_v14, %v7044_v54  ;;  %v5191_v43 = vpop.f32.mrb[6].mxu0 }
 0x1f9   : > { %v3608_v6 = vmax.f32 %v3576_v8, 0.0  ;;  %v5538_v25 = vadd.f32 %v5191_v43, %v4791_v23  ;;  %v3339_v20 = vpop.f32.mrb[7].mxu0 }
 0x1fa   : > { %v3607_v33 = vmax.f32 %v3575_v36, 0.0  ;;  %v5539_v31 = vadd.f32 %v3339_v20, %v1488_v52 }
 0x1fb   : > { %3640 = vst [vmem:[%s7050_s29 + $0x28] sm:$0xff] %v3608_v6  ;;  %v3578_v51 = vadd.f32 %v5538_v25, %v7044_v54 }
 0x1fc   : > { %3639 = vst [vmem:[%s7050_s29 + $0x20] sm:$0xff] %v3607_v33  ;;  %v3577_v10 = vadd.f32 %v5539_v31, %v7044_v54  ;;  %v5194_v49 = vpop.f32.mrb[8].mxu0 }
 0x1fd   : > { %v3610_v4 = vmax.f32 %v3578_v51, 0.0  ;;  %v5540_v18 = vadd.f32 %v5194_v49, %v4794_v55  ;;  %v3349_v41 = vpop.f32.mrb[9].mxu0 }
 0x1fe   : > { %v3609_v32 = vmax.f32 %v3577_v10, 0.0  ;;  %v5541_v16 = vadd.f32 %v3349_v41, %v1498_v26 }
 0x1ff   : > { %3642 = vst [vmem:[%s7050_s29 + $0x38] sm:$0xff] %v3610_v4  ;;  %v3580_v58 = vadd.f32 %v5540_v18, %v7044_v54 }
 0x200   : > { %3641 = vst [vmem:[%s7050_s29 + $0x30] sm:$0xff] %v3609_v32  ;;  %v3579_v48 = vadd.f32 %v5541_v16, %v7044_v54  ;;  %v5197_v9 = vpop.f32.mrb[10].mxu0 }
 0x201   : > { %v3612_v0 = vmax.f32 %v3580_v58, 0.0  ;;  %v5542_v21 = vadd.f32 %v5197_v9, %v4797_v27  ;;  %v3359_v62 = vpop.f32.mrb[11].mxu0 }
 0x202   : > { %v3611_v34 = vmax.f32 %v3579_v48, 0.0  ;;  %v5543_v35 = vadd.f32 %v3359_v62, %v1508_v40 }
 0x203   : > { %3644 = vst [vmem:[%s7050_s29 + $0x48] sm:$0xff] %v3612_v0  ;;  %v3582_v46 = vadd.f32 %v5542_v21, %v7044_v54 }
 0x204   : > { %3643 = vst [vmem:[%s7050_s29 + $0x40] sm:$0xff] %v3611_v34  ;;  %v3581_v38 = vadd.f32 %v5543_v35, %v7044_v54  ;;  %v5200_v57 = vpop.f32.mrb[12].mxu0 }
 0x205   : > { %v3614_v22 = vmax.f32 %v3582_v46, 0.0  ;;  %v5544_v39 = vadd.f32 %v5200_v57, %v7032_v56  ;;  %v3369_v5 = vpop.f32.mrb[13].mxu0 }
 0x206   : > { %v3613_v53 = vmax.f32 %v3581_v38, 0.0  ;;  %v5545_v28 = vadd.f32 %v3369_v5, %v7034_v2 }
 0x207   : > { %3646 = vst [vmem:[%s7050_s29 + $0x58] sm:$0xff] %v3614_v22  ;;  %v3584_v42 = vadd.f32 %v5544_v39, %v7044_v54 }
 0x208   : > { %3645 = vst [vmem:[%s7050_s29 + $0x50] sm:$0xff] %v3613_v53  ;;  %v3583_v23 = vadd.f32 %v5545_v28, %v7044_v54  ;;  %v5203_v52 = vpop.f32.mrb[14].mxu0 }
 0x209   : > { %v3616_v55 = vmax.f32 %v3584_v42, 0.0  ;;  %v5546_v26 = vadd.f32 %v5203_v52, %v7036_v1  ;;  %v3379_v27 = vpop.f32.mrb[15].mxu0 }
 0x20a   : > { %v3615_v40 = vmax.f32 %v3583_v23, 0.0  ;;  %v5547_v56 = vadd.f32 %v3379_v27, %v7038_v44 }
 0x20b   : > { %3648 = vst [vmem:[%s7050_s29 + $0x68] sm:$0xff] %v3616_v55  ;;  %v3586_v17 = vadd.f32 %v5546_v26, %v7044_v54  ;;  %v4886_v2 = vpop.f32.mrb[16].mxu1 }
 0x20c   : > { %3647 = vst [vmem:[%s7050_s29 + $0x60] sm:$0xff] %v3615_v40  ;;  %v3585_v11 = vadd.f32 %v5547_v56, %v7044_v54  ;;  %v5206_v15 = vpop.f32.mrb[16].mxu0  ;;  %v1908_v45 = vpop.f32.mrb[17].mxu1 }
 0x20d   : > { %v3618_v59 = vmax.f32 %v3586_v17, 0.0  ;;  %v5548_v37 = vadd.f32 %v5206_v15, %v4886_v2  ;;  %v3389_v3 = vpop.f32.mrb[17].mxu0 }
 0x20e   : > { %v3617_v1 = vmax.f32 %v3585_v11, 0.0  ;;  %v5549_v50 = vadd.f32 %v3389_v3, %v1908_v45 }
 0x20f   : > { %3650 = vst [vmem:[%s7050_s29 + $0x78] sm:$0xff] %v3618_v59  ;;  %v3588_v44 = vadd.f32 %v5548_v37, %v7044_v54  ;;  %v4889_v24 = vpop.f32.mrb[18].mxu1 }
 0x210   : > { %3649 = vst [vmem:[%s7050_s29 + $0x70] sm:$0xff] %v3617_v1  ;;  %v3587_v7 = vadd.f32 %v5549_v50, %v7044_v54  ;;  %v5209_v13 = vpop.f32.mrb[18].mxu0  ;;  %v1918_v12 = vpop.f32.mrb[19].mxu1 }
 0x211   : > { %v3620_v30 = vmax.f32 %v3588_v44, 0.0  ;;  %v5550_v60 = vadd.f32 %v5209_v13, %v4889_v24  ;;  %v3399_v29 = vpop.f32.mrb[19].mxu0 }
 0x212   : > { %v3619_v63 = vmax.f32 %v3587_v7, 0.0  ;;  %v5551_v47 = vadd.f32 %v3399_v29, %v1918_v12 }
 0x213   : > { %3652 = vst [vmem:[%s7050_s29 + $0x88] sm:$0xff] %v3620_v30  ;;  %v3590_v61 = vadd.f32 %v5550_v60, %v7044_v54  ;;  %v4892_v19 = vpop.f32.mrb[20].mxu1 }
 0x214   : > { %3651 = vst [vmem:[%s7050_s29 + $0x80] sm:$0xff] %v3619_v63  ;;  %v3589_v14 = vadd.f32 %v5551_v47, %v7044_v54  ;;  %v5212_v8 = vpop.f32.mrb[20].mxu0  ;;  %v1928_v36 = vpop.f32.mrb[21].mxu1 }
 0x215   : > { %v3622_v43 = vmax.f32 %v3590_v61, 0.0  ;;  %v5552_v6 = vadd.f32 %v5212_v8, %v4892_v19  ;;  %v3409_v25 = vpop.f32.mrb[21].mxu0 }
 0x216   : > { %v3621_v20 = vmax.f32 %v3589_v14, 0.0  ;;  %v5553_v33 = vadd.f32 %v3409_v25, %v1928_v36 }
 0x217   : > { %3654 = vst [vmem:[%s7050_s29 + $0x98] sm:$0xff] %v3622_v43  ;;  %v3592_v31 = vadd.f32 %v5552_v6, %v7044_v54  ;;  %v4895_v51 = vpop.f32.mrb[22].mxu1 }
 0x218   : > { %3653 = vst [vmem:[%s7050_s29 + $0x90] sm:$0xff] %v3621_v20  ;;  %v3591_v10 = vadd.f32 %v5553_v33, %v7044_v54  ;;  %v5215_v49 = vpop.f32.mrb[22].mxu0  ;;  %v1938_v4 = vpop.f32.mrb[23].mxu1 }
 0x219   : > { %v3624_v18 = vmax.f32 %v3592_v31, 0.0  ;;  %v5554_v41 = vadd.f32 %v5215_v49, %v4895_v51  ;;  %v3419_v32 = vpop.f32.mrb[23].mxu0 }
 0x21a   : > { %v3623_v16 = vmax.f32 %v3591_v10, 0.0  ;;  %v5555_v58 = vadd.f32 %v3419_v32, %v1938_v4 }
 0x21b   : > { %3656 = vst [vmem:[%s7050_s29 + $0xa8] sm:$0xff] %v3624_v18  ;;  %v3594_v48 = vadd.f32 %v5554_v41, %v7044_v54  ;;  %v4898_v9 = vpop.f32.mrb[24].mxu1 }
 0x21c   : > { %3655 = vst [vmem:[%s7050_s29 + $0xa0] sm:$0xff] %v3623_v16  ;;  %v3593_v0 = vadd.f32 %v5555_v58, %v7044_v54  ;;  %v5218_v21 = vpop.f32.mrb[24].mxu0  ;;  %v1948_v62 = vpop.f32.mrb[25].mxu1 }
 0x21d   : > { %v3626_v34 = vmax.f32 %v3594_v48, 0.0  ;;  %v5556_v35 = vadd.f32 %v5218_v21, %v4898_v9  ;;  %v3429_v46 = vpop.f32.mrb[25].mxu0 }
 0x21e   : > { %v3625_v38 = vmax.f32 %v3593_v0, 0.0  ;;  %v5557_v57 = vadd.f32 %v3429_v46, %v1948_v62 }
 0x21f   : > { %3658 = vst [vmem:[%s7050_s29 + $0xb8] sm:$0xff] %v3626_v34  ;;  %v3596_v22 = vadd.f32 %v5556_v35, %v7044_v54  ;;  %v4901_v39 = vpop.f32.mrb[26].mxu1 }
 0x220   : > { %3657 = vst [vmem:[%s7050_s29 + $0xb0] sm:$0xff] %v3625_v38  ;;  %v3595_v5 = vadd.f32 %v5557_v57, %v7044_v54  ;;  %v5221_v53 = vpop.f32.mrb[26].mxu0  ;;  %v1958_v28 = vpop.f32.mrb[27].mxu1 }
 0x221   : > { %v3628_v42 = vmax.f32 %v3596_v22, 0.0  ;;  %v5558_v23 = vadd.f32 %v5221_v53, %v4901_v39  ;;  %v3439_v52 = vpop.f32.mrb[27].mxu0 }
 0x222   : > { %v3627_v55 = vmax.f32 %v3595_v5, 0.0  ;;  %v5559_v26 = vadd.f32 %v3439_v52, %v1958_v28 }
 0x223   : > { %3660 = vst [vmem:[%s7050_s29 + $0xc8] sm:$0xff] %v3628_v42  ;;  %v3598_v27 = vadd.f32 %v5558_v23, %v7044_v54  ;;  %v4904_v40 = vpop.f32.mrb[28].mxu1 }
 0x224   : > { %3659 = vst [vmem:[%s7050_s29 + $0xc0] sm:$0xff] %v3627_v55  ;;  %v3597_v56 = vadd.f32 %v5559_v26, %v7044_v54  ;;  %v5224_v17 = vpop.f32.mrb[28].mxu0  ;;  %v1968_v2 = vpop.f32.mrb[29].mxu1 }
 0x225   : > { %v3630_v11 = vmax.f32 %v3598_v27, 0.0  ;;  %v5560_v15 = vadd.f32 %v5224_v17, %v4904_v40  ;;  %v3449_v45 = vpop.f32.mrb[29].mxu0 }
 0x226   : > { %v3629_v59 = vmax.f32 %v3597_v56, 0.0  ;;  %v5561_v37 = vadd.f32 %v3449_v45, %v1968_v2 }
 0x227   : > { %3662 = vst [vmem:[%s7050_s29 + $0xd8] sm:$0xff] %v3630_v11  ;;  %v3600_v3 = vadd.f32 %v5560_v15, %v7044_v54  ;;  %v4907_v1 = vpop.f32.mrb[30].mxu1 }
 0x228   : > { %3661 = vst [vmem:[%s7050_s29 + $0xd0] sm:$0xff] %v3629_v59  ;;  %v3599_v50 = vadd.f32 %v5561_v37, %v7044_v54  ;;  %v5227_v44 = vpop.f32.mrb[30].mxu0  ;;  %v1978_v24 = vpop.f32.mrb[31].mxu1 }
 0x229   : > { %v3632_v7 = vmax.f32 %v3600_v3, 0.0  ;;  %v5562_v13 = vadd.f32 %v5227_v44, %v4907_v1  ;;  %v3459_v12 = vpop.f32.mrb[31].mxu0 }
 0x22a   : > { %v3631_v30 = vmax.f32 %v3599_v50, 0.0  ;;  %v5563_v60 = vadd.f32 %v3459_v12, %v1978_v24 }
 0x22b   : > { %3664 = vst [vmem:[%s7050_s29 + $0xe8] sm:$0xff] %v3632_v7  ;;  %v3602_v29 = vadd.f32 %v5562_v13, %v7044_v54 }
 0x22c   : > { %3663 = vst [vmem:[%s7050_s29 + $0xe0] sm:$0xff] %v3631_v30  ;;  %v3601_v63 = vadd.f32 %v5563_v60, %v7044_v54 }
 0x22d   : > { %v3634_v47 = vmax.f32 %v3602_v29, 0.0 }
 0x22e   : > { %v3633_v61 = vmax.f32 %v3601_v63, 0.0 }
 0x22f   : > { %3666 = vst [vmem:[%s7050_s29 + $0xf8] sm:$0xff] %v3634_v47 }
 0x230   : > { %3665 = vst [vmem:[%s7050_s29 + $0xf0] sm:$0xff] %v3633_v61 }
 0x231   : > { %5843 = shalt.err (!%p5840_p3)
}
 0x232   : > { %s5844_s17 = scalar_lea.hbm %s7121_s7, 4096  ;;  %s5848_s25 = scalar_lea.hbm %s7173_s3, 8192 }
 0x233   : > { %p5845_p4 = scmp.ne.s32.totalorder %s7121_s7, %s5844_s17  ;;  %p5849_p9 = scmp.lt.u32.totalorder %s7121_s7, %s7173_s3 }
 0x234   : > { %p5850_p10 = scmp.lt.u32.totalorder %s5848_s25, %s5844_s17  ;;  %p5852_p12 = scmp.lt.u32.totalorder %s5844_s17, %s7121_s7 }
 0x235   : > { %p5846_p7 = pnand %p5845_p4, %p5955_p5 }
 0x236   : > { %p5851_p11 = por %p5850_p10, %p5849_p9 }
 0x237   : > { %p5847_p8 = pneg %p5846_p7 }
 0x238   : > { %p5853_p13 = por %p5852_p12, %p5851_p11 }
 0x23a   : > { %p5854_p0 = pnand %p5853_p13, %p5847_p8 }
 0x23c   : > { %5857 = shalt.err (!%p5854_p0)
}
 0x23d   : > { %s5895_s27 = smov 128   ;;  %s5896_s28 = smov 8  }
 0x23e   : > { %5789 = dma.vmem_to_hbm [thread:$0]  (%p5955_p5), %s7123_s4, 4096, %s7121_s7, %s7129_s16, %s5895_s27, %s5895_s27, %s5896_s28  }
 0x23f PF: > { %p5795_p1 = scmp.ge.s32.totalorder %s5892_s15, 2  ;;  %s3696_s29 = sand.u32 1, %s5880_s12  }
 0x240   : > { %s3697_s30 = scalar_lea.sflag [#allocation4], %s3696_s29 }
 0x241   : > { %p5792_p2 = pnand %p5795_p1, %p5959_p6 }
 0x243   : > { %5875 = dma.done.wait (!%p5792_p2), %s3697_s30, 4096  }
 0x244   : > { %5877 = vsyncadd (!%p5792_p2), %s3697_s30, 4294963200  ;;  %p13_p3 = scmp.ge.s32.totalorder %s5942_s18, 4   ;;  %s7235_s12 = smov %s5884_s13 }
 0x245   : > { %s7236_s13 = smov %s5888_s14  ;;  %s7237_s14 = smov %s5953_s21 }
 0x246   : > { %s7238_s15 = smov %s5942_s18  ;;  %15 = sbr.rel (!%p13_p3) target bundleno = 3 (0x3), region = 77 }
 0x24d   :  { %3702 = vsyncpa [#allocation4], 1 }
 0x24e   :  { %3704 = vsyncpa [#allocation4 + $0x1], 1 }

</bundles_post_ra>
